<compile_context>
chip_gen: v6e
topology: v6e:2x2x1
jax: 0.10.0
libtpu: 0.0.40
codegen_flags: <defaults>
</compile_context>

<pallas_src>
import functools
import math

import jax
import jax.numpy as jnp
from jax import lax
from jax.experimental import pallas as pl
from jax.experimental.pallas import tpu as pltpu

_LANE = 128
_TILE_VMEM_BUDGET = 40 * 1024 * 1024   # per-step budget; safe on v7x (64 MiB physical VMEM)
_VMEM_LIMIT_BYTES = 48 * 1024 * 1024   # above 16/32 MiB scoped defaults, below v7x physical


def _round_up(x, m):
    return ((x + m - 1) // m) * m


def _cdiv(a, b):
    return (a + b - 1) // b


def _gelu_exact(x):
    # PyTorch nn.GELU() default = exact erf formulation.
    return 0.5 * x * (1.0 + lax.erf(x * (1.0 / math.sqrt(2.0))))


def _tile_vmem_bytes(tl, pad, k, cin_p, cout_p, mm_bytes):
    """Rough per-grid-step VMEM footprint used to size the L tile."""
    tlh4, tlh2 = tl + 4 * pad, tl + 2 * pad
    x_io = 2 * tlh4 * cin_p * 4                       # double-buffered f32 input tile
    out_io = 2 * tl * cout_p * 4                      # double-buffered f32 output tile
    weights = (k * cin_p * cout_p + k * cout_p * cout_p
               + cin_p * cout_p) * mm_bytes           # single-buffered invariants
    params = 6 * cout_p * 4
    live = (tlh4 * cin_p + (2 * tlh2 + 2 * tl) * cout_p) * 4   # h1/h2/res/y temporaries
    return x_io + out_io + weights + params + live


def _temporal_block_kernel(*refs, tl, k, pad, dilation, seq_len, cout, eps,
                           identity_residual, mm_dtype):
    if identity_residual:
        (x_ref, w1_ref, b1_ref, w2_ref, b2_ref,
         gamma_ref, beta_ref, out_ref) = refs
        wds_ref = bds_ref = None
    else:
        (x_ref, w1_ref, b1_ref, w2_ref, b2_ref, wds_ref, bds_ref,
         gamma_ref, beta_ref, out_ref) = refs

    cout_p = out_ref.shape[-1]
    lh2 = tl + 2 * pad                      # conv1 rows needed by conv2 (incl. halo)

    x = x_ref[...]                          # (tl + 4*pad, cin_p), f32
    xm = x.astype(mm_dtype)

    # ---- conv1: dilated conv as K shifted MXU matmuls over the haloed tile ----
    h1 = jnp.dot(xm[0:lh2, :], w1_ref[0], preferred_element_type=jnp.float32)
    for t in range(1, k):
        o = t * dilation
        h1 = h1 + jnp.dot(xm[o:o + lh2, :], w1_ref[t],
                          preferred_element_type=jnp.float32)
    h1 = _gelu_exact(h1 + b1_ref[...])
    # dropout1: p = 0.0 -> identity

    # Rows of h1 whose global position falls outside [0, seq_len) must be zero:
    # PyTorch conv2 zero-pads conv1's *output*, not the virtual conv-of-padded-x.
    g0 = pl.program_id(1) * tl - pad
    gidx = g0 + lax.broadcasted_iota(jnp.int32, (lh2, 1), 0)
    h1 = jnp.where((gidx >= 0) & (gidx < seq_len), h1, 0.0)

    # ---- conv2: straight from registers (no padded VMEM scratch round trip) ----
    h1m = h1.astype(mm_dtype)
    h2 = jnp.dot(h1m[0:tl, :], w2_ref[0], preferred_element_type=jnp.float32)
    for t in range(1, k):
        o = t * dilation
        h2 = h2 + jnp.dot(h1m[o:o + tl, :], w2_ref[t],
                          preferred_element_type=jnp.float32)
    y = _gelu_exact(h2 + b2_ref[...])
    # dropout2: p = 0.0 -> identity

    # ---- residual ----
    if identity_residual:
        y = y + x[2 * pad:2 * pad + tl, :]            # true skip: no 1x1 matmul
    else:
        y = y + jnp.dot(xm[2 * pad:2 * pad + tl, :], wds_ref[...],
                        preferred_element_type=jnp.float32) + bds_ref[...]

    # ---- LayerNorm over the `cout` real channels ----
    # Padded channels of y are exactly zero (weights/biases zero-padded), so
    # plain sums divided by the true channel count give exact statistics.
    cmask = (lax.broadcasted_iota(jnp.int32, (tl, cout_p), 1) < cout
             ).astype(jnp.float32)
    inv_c = 1.0 / cout
    mean = jnp.sum(y, axis=-1, keepdims=True) * inv_c
    cent = (y - mean) * cmask
    var = jnp.sum(cent * cent, axis=-1, keepdims=True) * inv_c
    out = cent * lax.rsqrt(var + eps) * gamma_ref[...] + beta_ref[...]
    out_ref[...] = out.astype(out_ref.dtype)


def temporal_block(x, params, *, kernel_size, stride, dilation, eps=1e-5,
                   tile_l=256, use_bf16_matmul=True):
    """x: (B, C_in, L) float32 (PyTorch NCL). Returns (B, C_out, L) float32."""
    W1, b1, W2, b2, Wds, bds, gamma, beta = params
    assert stride == 1, "residual add requires stride == 1"
    assert (kernel_size - 1) * dilation % 2 == 0, (
        "(kernel_size-1)*dilation must be even: otherwise the PyTorch module's "
        "'same' padding / residual add does not type-check")
    B, Cin, L = x.shape
    Cout = W1.shape[0]
    K = kernel_size
    pad = (K - 1) * dilation // 2
    identity_residual = Wds is None
    if identity_residual:
        assert Cin == Cout

    mm_dtype = jnp.bfloat16 if use_bf16_matmul else jnp.float32
    mm_bytes = 2 if use_bf16_matmul else 4
    cin_p = _round_up(Cin, _LANE)
    cout_p = _round_up(Cout, _LANE)

    # ---- pick an L tile: multiple of 8 sublanes, bounded per-step VMEM ----
    tl = max(8, min(_round_up(tile_l, 8), _round_up(L, 8)))
    while tl > 8 and _tile_vmem_bytes(tl, pad, K, cin_p, cout_p, mm_bytes) > _TILE_VMEM_BUDGET:
        tl = max(8, _round_up(tl // 2, 8))
    nt = _cdiv(L, tl)
    lt = nt * tl
    tlh4 = tl + 4 * pad                     # haloed input rows per tile

    # ---- layout glue (plain JAX): NCL -> NLC, pad channels to 128 lanes,
    #      build overlapping haloed L tiles so BlockSpecs stay rectangular ----
    # TODO(synk): the NCL<->NLC transposes / zero-pad / halo duplication stay in
    # the wrapper; fusing them into the kernel would need manual DMA gathers.
    x_blc = jnp.transpose(x, (0, 2, 1)).astype(jnp.float32)        # (B, L, Cin)
    xz = jnp.pad(x_blc, ((0, 0), (2 * pad, 2 * pad + lt - L), (0, cin_p - Cin)))
    x_halo = jnp.stack([xz[:, i * tl:i * tl + tlh4, :] for i in range(nt)],
                       axis=1)                                     # (B, nt, tlh4, cin_p)

    # weights: torch (Cout, Cin, K) -> (K, Cin_p, Cout_p), zero-padded, matmul dtype
    w1p = jnp.pad(jnp.transpose(W1, (2, 1, 0)),
                  ((0, 0), (0, cin_p - Cin), (0, cout_p - Cout))).astype(mm_dtype)
    w2p = jnp.pad(jnp.transpose(W2, (2, 1, 0)),
                  ((0, 0), (0, cout_p - Cout), (0, cout_p - Cout))).astype(mm_dtype)
    b1p = jnp.pad(b1, (0, cout_p - Cout)).reshape(1, -1).astype(jnp.float32)
    b2p = jnp.pad(b2, (0, cout_p - Cout)).reshape(1, -1).astype(jnp.float32)
    gp = jnp.pad(gamma, (0, cout_p - Cout)).reshape(1, -1).astype(jnp.float32)
    bp = jnp.pad(beta, (0, cout_p - Cout)).reshape(1, -1).astype(jnp.float32)

    args = [x_halo, w1p, b1p, w2p, b2p]
    if not identity_residual:
        wdsp = jnp.pad(jnp.transpose(Wds[:, :, 0], (1, 0)),
                       ((0, cin_p - Cin), (0, cout_p - Cout))).astype(mm_dtype)
        bdsp = jnp.pad(bds, (0, cout_p - Cout)).reshape(1, -1).astype(jnp.float32)
        args += [wdsp, bdsp]
    args += [gp, bp]

    kernel = functools.partial(
        _temporal_block_kernel, tl=tl, k=K, pad=pad, dilation=dilation,
        seq_len=L, cout=Cout, eps=eps, identity_residual=identity_residual,
        mm_dtype=mm_dtype)

    def build_and_run(weight_mode):
        def inv_spec(shape):   # grid-invariant parameter (weights / biases / LN params)
            kw = {} if weight_mode is None else {"pipeline_mode": weight_mode}
            return pl.BlockSpec(shape, lambda b, i: (0,) * len(shape), **kw)

        in_specs = [pl.BlockSpec((None, None, tlh4, cin_p),
                                 lambda b, i: (b, i, 0, 0)),
                    inv_spec((K, cin_p, cout_p)), inv_spec((1, cout_p)),
                    inv_spec((K, cout_p, cout_p)), inv_spec((1, cout_p))]
        if not identity_residual:
            in_specs += [inv_spec((cin_p, cout_p)), inv_spec((1, cout_p))]
        in_specs += [inv_spec((1, cout_p)), inv_spec((1, cout_p))]

        return pl.pallas_call(
            kernel,
            out_shape=jax.ShapeDtypeStruct((B, lt, cout_p), jnp.float32),
            grid_spec=pltpu.PrefetchScalarGridSpec(
                num_scalar_prefetch=0,
                grid=(B, nt),
                in_specs=in_specs,
                out_specs=pl.BlockSpec((None, tl, cout_p), lambda b, i: (b, i, 0)),
            ),
            compiler_params=pltpu.CompilerParams(
                dimension_semantics=("parallel", "parallel"),
                vmem_limit_bytes=_VMEM_LIMIT_BYTES),
        )(*args)

    try:
        # single-buffer the grid-invariant inputs (saves VMEM, DMA'd once)
        out_p = build_and_run(pl.Buffered(1))
    except Exception:
        # fall back to default double-buffering if single-buffer mode is unavailable
        out_p = build_and_run(None)

    return jnp.transpose(out_p[:, :L, :Cout], (0, 2, 1))           # (B, Cout, L)


def temporal_block_ref(x, params, *, kernel_size, stride, dilation, eps=1e-5,
                       mm_dtype=jnp.float32):
    """Pure-JAX reference (same math, no Pallas); mm_dtype = matmul operand dtype."""
    del stride
    W1, b1, W2, b2, Wds, bds, gamma, beta = params
    B, Cin, L = x.shape
    K = kernel_size
    pad = (K - 1) * dilation // 2
    x_blc = jnp.transpose(x, (0, 2, 1)).astype(jnp.float32)

    def conv(inp, W, b):       # inp (B, L, C), W (Co, Ci, K)
        ip = jnp.pad(inp, ((0, 0), (pad, pad), (0, 0)))
        acc = jnp.zeros((B, L, W.shape[0]), jnp.float32)
        for t in range(K):
            acc = acc + jnp.einsum(
                "blc,oc->blo",
                ip[:, t * dilation:t * dilation + L, :].astype(mm_dtype),
                W[:, :, t].astype(mm_dtype),
                preferred_element_type=jnp.float32)
        return acc + b

    h = _gelu_exact(conv(x_blc, W1, b1))
    h = _gelu_exact(conv(h, W2, b2))
    if Wds is None:
        res = x_blc
    else:
        res = jnp.einsum("blc,oc->blo", x_blc.astype(mm_dtype),
                         Wds[:, :, 0].astype(mm_dtype),
                         preferred_element_type=jnp.float32) + bds
    y = h + res
    mean = jnp.mean(y, axis=-1, keepdims=True)
    var = jnp.mean((y - mean) ** 2, axis=-1, keepdims=True)
    y = (y - mean) * lax.rsqrt(var + eps) * gamma + beta
    return jnp.transpose(y, (0, 2, 1))


def init_params(key, in_channels, out_channels, kernel_size):
    """Deterministic synthetic parameters (shapes match nn.Conv1d / nn.LayerNorm)."""
    ks = jax.random.split(key, 6)
    s1 = 1.0 / math.sqrt(in_channels * kernel_size)
    s2 = 1.0 / math.sqrt(out_channels * kernel_size)
    W1 = jax.random.uniform(ks[0], (out_channels, in_channels, kernel_size),
                            jnp.float32, -s1, s1)
    b1 = jax.random.uniform(ks[1], (out_channels,), jnp.float32, -s1, s1)
    W2 = jax.random.uniform(ks[2], (out_channels, out_channels, kernel_size),
                            jnp.float32, -s2, s2)
    b2 = jax.random.uniform(ks[3], (out_channels,), jnp.float32, -s2, s2)
    if in_channels != out_channels:
        sd = 1.0 / math.sqrt(in_channels)
        Wds = jax.random.uniform(ks[4], (out_channels, in_channels, 1),
                                 jnp.float32, -sd, sd)
        bds = jax.random.uniform(ks[5], (out_channels,), jnp.float32, -sd, sd)
    else:
        Wds, bds = None, None          # downsample is None -> true identity skip
    gamma = jnp.ones((out_channels,), jnp.float32)    # nn.LayerNorm defaults
    beta = jnp.zeros((out_channels,), jnp.float32)
    return (W1, b1, W2, b2, Wds, bds, gamma, beta)


if __name__ == "__main__":
    key = jax.random.PRNGKey(0)
    # (B, Cin, Cout, L, K, dilation, tile_l):
    #   1) downsample residual, single L tile
    #   2) identity residual, dilation=2, multi-tile grid (exercises the halo path)
    configs = [
        (2, 4, 8, 16, 3, 1, 256),
        (2, 8, 8, 40, 3, 2, 16),
    ]
    for (B, Cin, Cout, L, K, dil, tl) in configs:
        key, kx, kp = jax.random.split(key, 3)
        x = jax.random.normal(kx, (B, Cin, L), jnp.float32)
        params = init_params(kp, Cin, Cout, K)

        out = temporal_block(x, params, kernel_size=K, stride=1, dilation=dil,
                             tile_l=tl, use_bf16_matmul=True)
        out = jax.block_until_ready(out)
        assert out.shape == (B, Cout, L)

        # matched-precision reference (bf16 matmul operands, everything else f32)
        ref = temporal_block_ref(x, params, kernel_size=K, stride=1,
                                 dilation=dil, mm_dtype=jnp.bfloat16)
        err = float(jnp.max(jnp.abs(out - ref)))
        assert err < 5e-3, f"mismatch vs matched-precision reference: {err}"

        # loose sanity bound vs the full-f32 reference (bf16 matmul rounding)
        ref32 = temporal_block_ref(x, params, kernel_size=K, stride=1,
                                   dilation=dil, mm_dtype=jnp.float32)
        err32 = float(jnp.max(jnp.abs(out - ref32)))
        assert err32 < 1e-1, f"mismatch vs f32 reference: {err32}"
    print("KERNEL_OK")
</pallas_src>

<mosaic_0001>
module attributes {stable_mosaic.version = 11 : i64} {
  func.func @_temporal_block_kernel(%arg0: i32, %arg1: i32, %arg2: memref<1x1x20x128xf32, #tpu.memory_space<vmem>>, %arg3: memref<3x128x128xbf16, #tpu.memory_space<vmem>>, %arg4: memref<1x128xf32, #tpu.memory_space<vmem>>, %arg5: memref<3x128x128xbf16, #tpu.memory_space<vmem>>, %arg6: memref<1x128xf32, #tpu.memory_space<vmem>>, %arg7: memref<128x128xbf16, #tpu.memory_space<vmem>>, %arg8: memref<1x128xf32, #tpu.memory_space<vmem>>, %arg9: memref<1x128xf32, #tpu.memory_space<vmem>>, %arg10: memref<1x128xf32, #tpu.memory_space<vmem>>, %arg11: memref<1x16x128xf32, #tpu.memory_space<vmem>>) attributes {dimension_semantics = [#tpu.dimension_semantics<parallel>, #tpu.dimension_semantics<parallel>], iteration_bounds = array<i64: 2, 1>, scalar_prefetch = 0 : i64, scratch_operands = 0 : i64, tpu.core_type = #tpu.core_type<tc>, window_params = [{transform_indices = @transform_0, window_bounds = array<i64: 1, 1, 20, 128>}, {pipeline_mode = #tpu.pipeline_mode<synchronous>, transform_indices = @transform_1, window_bounds = array<i64: 3, 128, 128>}, {pipeline_mode = #tpu.pipeline_mode<synchronous>, transform_indices = @transform_2, window_bounds = array<i64: 1, 128>}, {pipeline_mode = #tpu.pipeline_mode<synchronous>, transform_indices = @transform_3, window_bounds = array<i64: 3, 128, 128>}, {pipeline_mode = #tpu.pipeline_mode<synchronous>, transform_indices = @transform_4, window_bounds = array<i64: 1, 128>}, {pipeline_mode = #tpu.pipeline_mode<synchronous>, transform_indices = @transform_5, window_bounds = array<i64: 128, 128>}, {pipeline_mode = #tpu.pipeline_mode<synchronous>, transform_indices = @transform_6, window_bounds = array<i64: 1, 128>}, {pipeline_mode = #tpu.pipeline_mode<synchronous>, transform_indices = @transform_7, window_bounds = array<i64: 1, 128>}, {pipeline_mode = #tpu.pipeline_mode<synchronous>, transform_indices = @transform_8, window_bounds = array<i64: 1, 128>}, {transform_indices = @transform_9, window_bounds = array<i64: 1, 16, 128>}]} {
    %c0 = arith.constant 0 : index
    %c0_0 = arith.constant 0 : index
    %c0_1 = arith.constant 0 : index
    %c0_2 = arith.constant 0 : index
    %0 = vector.load %arg2[%c0, %c0_0, %c0_1, %c0_2] : memref<1x1x20x128xf32, #tpu.memory_space<vmem>>, vector<1x1x20x128xf32>
    %1 = vector.shape_cast %0 : vector<1x1x20x128xf32> to vector<20x128xf32>
    %2 = arith.truncf %1 : vector<20x128xf32> to vector<20x128xbf16>
    %3 = vector.extract_strided_slice %2 {offsets = [0, 0], sizes = [18, 128], strides = [1, 1]} : vector<20x128xbf16> to vector<18x128xbf16>
    %c0_3 = arith.constant 0 : index
    %c0_4 = arith.constant 0 : index
    %c0_5 = arith.constant 0 : index
    %4 = vector.load %arg3[%c0_3, %c0_4, %c0_5] : memref<3x128x128xbf16, #tpu.memory_space<vmem>>, vector<1x128x128xbf16>
    %5 = vector.shape_cast %4 : vector<1x128x128xbf16> to vector<128x128xbf16>
    %cst = arith.constant dense<0.000000e+00> : vector<18x128xf32>
    %6 = tpu.matmul %3, %5, %cst {dimension_numbers = #tpu.dot_dimension_numbers<[1], [0], [0], [1], [0, 0, 1, 1], [], []>} : vector<18x128xbf16>, vector<128x128xbf16>, vector<18x128xf32> -> vector<18x128xf32>
    %7 = vector.extract_strided_slice %2 {offsets = [1, 0], sizes = [18, 128], strides = [1, 1]} : vector<20x128xbf16> to vector<18x128xbf16>
    %c1 = arith.constant 1 : index
    %c0_6 = arith.constant 0 : index
    %c0_7 = arith.constant 0 : index
    %8 = vector.load %arg3[%c1, %c0_6, %c0_7] : memref<3x128x128xbf16, #tpu.memory_space<vmem>>, vector<1x128x128xbf16>
    %9 = vector.shape_cast %8 : vector<1x128x128xbf16> to vector<128x128xbf16>
    %cst_8 = arith.constant dense<0.000000e+00> : vector<18x128xf32>
    %10 = tpu.matmul %7, %9, %cst_8 {dimension_numbers = #tpu.dot_dimension_numbers<[1], [0], [0], [1], [0, 0, 1, 1], [], []>} : vector<18x128xbf16>, vector<128x128xbf16>, vector<18x128xf32> -> vector<18x128xf32>
    %11 = arith.addf %6, %10 : vector<18x128xf32>
    %12 = vector.extract_strided_slice %2 {offsets = [2, 0], sizes = [18, 128], strides = [1, 1]} : vector<20x128xbf16> to vector<18x128xbf16>
    %c2 = arith.constant 2 : index
    %c0_9 = arith.constant 0 : index
    %c0_10 = arith.constant 0 : index
    %13 = vector.load %arg3[%c2, %c0_9, %c0_10] : memref<3x128x128xbf16, #tpu.memory_space<vmem>>, vector<1x128x128xbf16>
    %14 = vector.shape_cast %13 : vector<1x128x128xbf16> to vector<128x128xbf16>
    %cst_11 = arith.constant dense<0.000000e+00> : vector<18x128xf32>
    %15 = tpu.matmul %12, %14, %cst_11 {dimension_numbers = #tpu.dot_dimension_numbers<[1], [0], [0], [1], [0, 0, 1, 1], [], []>} : vector<18x128xbf16>, vector<128x128xbf16>, vector<18x128xf32> -> vector<18x128xf32>
    %16 = arith.addf %11, %15 : vector<18x128xf32>
    %c0_12 = arith.constant 0 : index
    %c0_13 = arith.constant 0 : index
    %17 = vector.load %arg4[%c0_12, %c0_13] : memref<1x128xf32, #tpu.memory_space<vmem>>, vector<1x128xf32>
    %18 = vector.broadcast %17 : vector<1x128xf32> to vector<18x128xf32>
    %19 = arith.addf %16, %18 : vector<18x128xf32>
    %cst_14 = arith.constant 5.000000e-01 : f32
    %20 = vector.broadcast %cst_14 : f32 to vector<18x128xf32>
    %21 = arith.mulf %20, %19 : vector<18x128xf32>
    %cst_15 = arith.constant 0.707106769 : f32
    %22 = vector.broadcast %cst_15 : f32 to vector<18x128xf32>
    %23 = arith.mulf %19, %22 : vector<18x128xf32>
    %24 = math.erf %23 : vector<18x128xf32>
    %cst_16 = arith.constant 1.000000e+00 : f32
    %25 = vector.broadcast %cst_16 : f32 to vector<18x128xf32>
    %26 = arith.addf %25, %24 : vector<18x128xf32>
    %27 = arith.mulf %21, %26 : vector<18x128xf32>
    %c16_i32 = arith.constant 16 : i32
    %28 = arith.muli %arg1, %c16_i32 : i32
    %c1_i32 = arith.constant 1 : i32
    %29 = arith.subi %28, %c1_i32 : i32
    %30 = tpu.iota {dimensions = array<i32: 0>} : vector<18x1xi32>
    %31 = vector.broadcast %29 : i32 to vector<18x1xi32>
    %32 = arith.addi %31, %30 : vector<18x1xi32>
    %c0_i32 = arith.constant 0 : i32
    %33 = vector.broadcast %c0_i32 : i32 to vector<18x1xi32>
    %34 = arith.cmpi sge, %32, %33 : vector<18x1xi32>
    %c16_i32_17 = arith.constant 16 : i32
    %35 = vector.broadcast %c16_i32_17 : i32 to vector<18x1xi32>
    %36 = arith.cmpi slt, %32, %35 : vector<18x1xi32>
    %37 = arith.andi %34, %36 : vector<18x1xi1>
    %cst_18 = arith.constant 0.000000e+00 : f32
    %38 = vector.shape_cast %37 : vector<18x1xi1> to vector<18x1xi1>
    %39 = vector.broadcast %38 : vector<18x1xi1> to vector<18x128xi1>
    %40 = vector.broadcast %cst_18 : f32 to vector<18x128xf32>
    %41 = arith.select %39, %27, %40 : vector<18x128xi1>, vector<18x128xf32>
    %42 = arith.truncf %41 : vector<18x128xf32> to vector<18x128xbf16>
    %43 = vector.extract_strided_slice %42 {offsets = [0, 0], sizes = [16, 128], strides = [1, 1]} : vector<18x128xbf16> to vector<16x128xbf16>
    %c0_19 = arith.constant 0 : index
    %c0_20 = arith.constant 0 : index
    %c0_21 = arith.constant 0 : index
    %44 = vector.load %arg5[%c0_19, %c0_20, %c0_21] : memref<3x128x128xbf16, #tpu.memory_space<vmem>>, vector<1x128x128xbf16>
    %45 = vector.shape_cast %44 : vector<1x128x128xbf16> to vector<128x128xbf16>
    %cst_22 = arith.constant dense<0.000000e+00> : vector<16x128xf32>
    %46 = tpu.matmul %43, %45, %cst_22 {dimension_numbers = #tpu.dot_dimension_numbers<[1], [0], [0], [1], [0, 0, 1, 1], [], []>} : vector<16x128xbf16>, vector<128x128xbf16>, vector<16x128xf32> -> vector<16x128xf32>
    %47 = vector.extract_strided_slice %42 {offsets = [1, 0], sizes = [16, 128], strides = [1, 1]} : vector<18x128xbf16> to vector<16x128xbf16>
    %c1_23 = arith.constant 1 : index
    %c0_24 = arith.constant 0 : index
    %c0_25 = arith.constant 0 : index
    %48 = vector.load %arg5[%c1_23, %c0_24, %c0_25] : memref<3x128x128xbf16, #tpu.memory_space<vmem>>, vector<1x128x128xbf16>
    %49 = vector.shape_cast %48 : vector<1x128x128xbf16> to vector<128x128xbf16>
    %cst_26 = arith.constant dense<0.000000e+00> : vector<16x128xf32>
    %50 = tpu.matmul %47, %49, %cst_26 {dimension_numbers = #tpu.dot_dimension_numbers<[1], [0], [0], [1], [0, 0, 1, 1], [], []>} : vector<16x128xbf16>, vector<128x128xbf16>, vector<16x128xf32> -> vector<16x128xf32>
    %51 = arith.addf %46, %50 : vector<16x128xf32>
    %52 = vector.extract_strided_slice %42 {offsets = [2, 0], sizes = [16, 128], strides = [1, 1]} : vector<18x128xbf16> to vector<16x128xbf16>
    %c2_27 = arith.constant 2 : index
    %c0_28 = arith.constant 0 : index
    %c0_29 = arith.constant 0 : index
    %53 = vector.load %arg5[%c2_27, %c0_28, %c0_29] : memref<3x128x128xbf16, #tpu.memory_space<vmem>>, vector<1x128x128xbf16>
    %54 = vector.shape_cast %53 : vector<1x128x128xbf16> to vector<128x128xbf16>
    %cst_30 = arith.constant dense<0.000000e+00> : vector<16x128xf32>
    %55 = tpu.matmul %52, %54, %cst_30 {dimension_numbers = #tpu.dot_dimension_numbers<[1], [0], [0], [1], [0, 0, 1, 1], [], []>} : vector<16x128xbf16>, vector<128x128xbf16>, vector<16x128xf32> -> vector<16x128xf32>
    %56 = arith.addf %51, %55 : vector<16x128xf32>
    %c0_31 = arith.constant 0 : index
    %c0_32 = arith.constant 0 : index
    %57 = vector.load %arg6[%c0_31, %c0_32] : memref<1x128xf32, #tpu.memory_space<vmem>>, vector<1x128xf32>
    %58 = vector.broadcast %57 : vector<1x128xf32> to vector<16x128xf32>
    %59 = arith.addf %56, %58 : vector<16x128xf32>
    %cst_33 = arith.constant 5.000000e-01 : f32
    %60 = vector.broadcast %cst_33 : f32 to vector<16x128xf32>
    %61 = arith.mulf %60, %59 : vector<16x128xf32>
    %cst_34 = arith.constant 0.707106769 : f32
    %62 = vector.broadcast %cst_34 : f32 to vector<16x128xf32>
    %63 = arith.mulf %59, %62 : vector<16x128xf32>
    %64 = math.erf %63 : vector<16x128xf32>
    %cst_35 = arith.constant 1.000000e+00 : f32
    %65 = vector.broadcast %cst_35 : f32 to vector<16x128xf32>
    %66 = arith.addf %65, %64 : vector<16x128xf32>
    %67 = arith.mulf %61, %66 : vector<16x128xf32>
    %68 = vector.extract_strided_slice %2 {offsets = [2, 0], sizes = [16, 128], strides = [1, 1]} : vector<20x128xbf16> to vector<16x128xbf16>
    %c0_36 = arith.constant 0 : index
    %c0_37 = arith.constant 0 : index
    %69 = vector.load %arg7[%c0_36, %c0_37] : memref<128x128xbf16, #tpu.memory_space<vmem>>, vector<128x128xbf16>
    %cst_38 = arith.constant dense<0.000000e+00> : vector<16x128xf32>
    %70 = tpu.matmul %68, %69, %cst_38 {dimension_numbers = #tpu.dot_dimension_numbers<[1], [0], [0], [1], [0, 0, 1, 1], [], []>} : vector<16x128xbf16>, vector<128x128xbf16>, vector<16x128xf32> -> vector<16x128xf32>
    %71 = arith.addf %67, %70 : vector<16x128xf32>
    %c0_39 = arith.constant 0 : index
    %c0_40 = arith.constant 0 : index
    %72 = vector.load %arg8[%c0_39, %c0_40] : memref<1x128xf32, #tpu.memory_space<vmem>>, vector<1x128xf32>
    %73 = vector.broadcast %72 : vector<1x128xf32> to vector<16x128xf32>
    %74 = arith.addf %71, %73 : vector<16x128xf32>
    %75 = tpu.iota {dimensions = array<i32: 1>} : vector<16x128xi32>
    %c8_i32 = arith.constant 8 : i32
    %76 = vector.broadcast %c8_i32 : i32 to vector<16x128xi32>
    %77 = arith.cmpi slt, %75, %76 : vector<16x128xi32>
    %78 = arith.extui %77 : vector<16x128xi1> to vector<16x128xi32>
    %79 = arith.sitofp %78 : vector<16x128xi32> to vector<16x128xf32>
    %cst_41 = arith.constant dense<0.000000e+00> : vector<16xf32>
    %80 = vector.multi_reduction <add>, %74, %cst_41 [1] : vector<16x128xf32> to vector<16xf32>
    %81 = vector.shape_cast %80 : vector<16xf32> to vector<16x1xf32>
    %cst_42 = arith.constant 1.250000e-01 : f32
    %82 = vector.broadcast %cst_42 : f32 to vector<16x1xf32>
    %83 = arith.mulf %81, %82 : vector<16x1xf32>
    %84 = vector.broadcast %83 : vector<16x1xf32> to vector<16x128xf32>
    %85 = arith.subf %74, %84 : vector<16x128xf32>
    %86 = arith.mulf %85, %79 : vector<16x128xf32>
    %87 = arith.mulf %86, %86 : vector<16x128xf32>
    %cst_43 = arith.constant dense<0.000000e+00> : vector<16xf32>
    %88 = vector.multi_reduction <add>, %87, %cst_43 [1] : vector<16x128xf32> to vector<16xf32>
    %89 = vector.shape_cast %88 : vector<16xf32> to vector<16x1xf32>
    %cst_44 = arith.constant 1.250000e-01 : f32
    %90 = vector.broadcast %cst_44 : f32 to vector<16x1xf32>
    %91 = arith.mulf %89, %90 : vector<16x1xf32>
    %cst_45 = arith.constant 9.99999974E-6 : f32
    %92 = vector.broadcast %cst_45 : f32 to vector<16x1xf32>
    %93 = arith.addf %91, %92 : vector<16x1xf32>
    %94 = math.rsqrt %93 : vector<16x1xf32>
    %95 = vector.broadcast %94 : vector<16x1xf32> to vector<16x128xf32>
    %96 = arith.mulf %86, %95 : vector<16x128xf32>
    %c0_46 = arith.constant 0 : index
    %c0_47 = arith.constant 0 : index
    %97 = vector.load %arg9[%c0_46, %c0_47] : memref<1x128xf32, #tpu.memory_space<vmem>>, vector<1x128xf32>
    %98 = vector.broadcast %97 : vector<1x128xf32> to vector<16x128xf32>
    %99 = arith.mulf %96, %98 : vector<16x128xf32>
    %c0_48 = arith.constant 0 : index
    %c0_49 = arith.constant 0 : index
    %100 = vector.load %arg10[%c0_48, %c0_49] : memref<1x128xf32, #tpu.memory_space<vmem>>, vector<1x128xf32>
    %101 = vector.broadcast %100 : vector<1x128xf32> to vector<16x128xf32>
    %102 = arith.addf %99, %101 : vector<16x128xf32>
    %c0_50 = arith.constant 0 : index
    %c0_51 = arith.constant 0 : index
    %c0_52 = arith.constant 0 : index
    %103 = vector.load %arg11[%c0_50, %c0_51, %c0_52] : memref<1x16x128xf32, #tpu.memory_space<vmem>>, vector<1x16x128xf32>
    %104 = vector.shape_cast %103 : vector<1x16x128xf32> to vector<16x128xf32>
    %105 = vector.shape_cast %102 : vector<16x128xf32> to vector<1x16x128xf32>
    tpu.vector_store %arg11[%c0_50, %c0_51, %c0_52], %105 {strides = array<i32>} : memref<1x16x128xf32, #tpu.memory_space<vmem>>, vector<1x16x128xf32>,
    return
  }
  func.func @transform_0(%arg0: i32, %arg1: i32) -> (i32, i32, i32, i32) {
    %c0_i32 = arith.constant 0 : i32
    %c0_i32_0 = arith.constant 0 : i32
    %c0_i32_1 = arith.constant 0 : i32
    return %arg0, %arg1, %c0_i32, %c0_i32_0 : i32, i32, i32, i32
  }
  func.func @transform_1(%arg0: i32, %arg1: i32) -> (i32, i32, i32) {
    %c0_i32 = arith.constant 0 : i32
    %c0_i32_0 = arith.constant 0 : i32
    %c0_i32_1 = arith.constant 0 : i32
    %c0_i32_2 = arith.constant 0 : i32
    return %c0_i32, %c0_i32_0, %c0_i32_1 : i32, i32, i32
  }
  func.func @transform_2(%arg0: i32, %arg1: i32) -> (i32, i32) {
    %c0_i32 = arith.constant 0 : i32
    %c0_i32_0 = arith.constant 0 : i32
    %c0_i32_1 = arith.constant 0 : i32
    return %c0_i32, %c0_i32_0 : i32, i32
  }
  func.func @transform_3(%arg0: i32, %arg1: i32) -> (i32, i32, i32) {
    %c0_i32 = arith.constant 0 : i32
    %c0_i32_0 = arith.constant 0 : i32
    %c0_i32_1 = arith.constant 0 : i32
    %c0_i32_2 = arith.constant 0 : i32
    return %c0_i32, %c0_i32_0, %c0_i32_1 : i32, i32, i32
  }
  func.func @transform_4(%arg0: i32, %arg1: i32) -> (i32, i32) {
    %c0_i32 = arith.constant 0 : i32
    %c0_i32_0 = arith.constant 0 : i32
    %c0_i32_1 = arith.constant 0 : i32
    return %c0_i32, %c0_i32_0 : i32, i32
  }
  func.func @transform_5(%arg0: i32, %arg1: i32) -> (i32, i32) {
    %c0_i32 = arith.constant 0 : i32
    %c0_i32_0 = arith.constant 0 : i32
    %c0_i32_1 = arith.constant 0 : i32
    return %c0_i32, %c0_i32_0 : i32, i32
  }
  func.func @transform_6(%arg0: i32, %arg1: i32) -> (i32, i32) {
    %c0_i32 = arith.constant 0 : i32
    %c0_i32_0 = arith.constant 0 : i32
    %c0_i32_1 = arith.constant 0 : i32
    return %c0_i32, %c0_i32_0 : i32, i32
  }
  func.func @transform_7(%arg0: i32, %arg1: i32) -> (i32, i32) {
    %c0_i32 = arith.constant 0 : i32
    %c0_i32_0 = arith.constant 0 : i32
    %c0_i32_1 = arith.constant 0 : i32
    return %c0_i32, %c0_i32_0 : i32, i32
  }
  func.func @transform_8(%arg0: i32, %arg1: i32) -> (i32, i32) {
    %c0_i32 = arith.constant 0 : i32
    %c0_i32_0 = arith.constant 0 : i32
    %c0_i32_1 = arith.constant 0 : i32
    return %c0_i32, %c0_i32_0 : i32, i32
  }
  func.func @transform_9(%arg0: i32, %arg1: i32) -> (i32, i32, i32) {
    %c0_i32 = arith.constant 0 : i32
    %c0_i32_0 = arith.constant 0 : i32
    return %arg0, %arg1, %c0_i32 : i32, i32, i32
  }
}

module attributes {stable_mosaic.version = 11 : i64} {
  func.func @_temporal_block_kernel(%arg0: i32, %arg1: i32, %arg2: memref<1x1x20x128xf32, #tpu.memory_space<vmem>>, %arg3: memref<3x128x128xbf16, #tpu.memory_space<vmem>>, %arg4: memref<1x128xf32, #tpu.memory_space<vmem>>, %arg5: memref<3x128x128xbf16, #tpu.memory_space<vmem>>, %arg6: memref<1x128xf32, #tpu.memory_space<vmem>>, %arg7: memref<128x128xbf16, #tpu.memory_space<vmem>>, %arg8: memref<1x128xf32, #tpu.memory_space<vmem>>, %arg9: memref<1x128xf32, #tpu.memory_space<vmem>>, %arg10: memref<1x128xf32, #tpu.memory_space<vmem>>, %arg11: memref<1x16x128xf32, #tpu.memory_space<vmem>>) attributes {dimension_semantics = [#tpu.dimension_semantics<parallel>, #tpu.dimension_semantics<parallel>], iteration_bounds = array<i64: 2, 1>, scalar_prefetch = 0 : i64, scratch_operands = 0 : i64, tpu.core_type = #tpu.core_type<tc>, window_params = [{transform_indices = @transform_0, window_bounds = array<i64: 1, 1, 20, 128>}, {pipeline_mode = #tpu.pipeline_mode<synchronous>, transform_indices = @transform_1, window_bounds = array<i64: 3, 128, 128>}, {pipeline_mode = #tpu.pipeline_mode<synchronous>, transform_indices = @transform_2, window_bounds = array<i64: 1, 128>}, {pipeline_mode = #tpu.pipeline_mode<synchronous>, transform_indices = @transform_3, window_bounds = array<i64: 3, 128, 128>}, {pipeline_mode = #tpu.pipeline_mode<synchronous>, transform_indices = @transform_4, window_bounds = array<i64: 1, 128>}, {pipeline_mode = #tpu.pipeline_mode<synchronous>, transform_indices = @transform_5, window_bounds = array<i64: 128, 128>}, {pipeline_mode = #tpu.pipeline_mode<synchronous>, transform_indices = @transform_6, window_bounds = array<i64: 1, 128>}, {pipeline_mode = #tpu.pipeline_mode<synchronous>, transform_indices = @transform_7, window_bounds = array<i64: 1, 128>}, {pipeline_mode = #tpu.pipeline_mode<synchronous>, transform_indices = @transform_8, window_bounds = array<i64: 1, 128>}, {transform_indices = @transform_9, window_bounds = array<i64: 1, 16, 128>}]} {
    %c0 = arith.constant 0 : index
    %c0_0 = arith.constant 0 : index
    %c0_1 = arith.constant 0 : index
    %c0_2 = arith.constant 0 : index
    %0 = vector.load %arg2[%c0, %c0_0, %c0_1, %c0_2] : memref<1x1x20x128xf32, #tpu.memory_space<vmem>>, vector<1x1x20x128xf32>
    %1 = vector.shape_cast %0 : vector<1x1x20x128xf32> to vector<20x128xf32>
    %2 = arith.truncf %1 : vector<20x128xf32> to vector<20x128xbf16>
    %3 = vector.extract_strided_slice %2 {offsets = [0, 0], sizes = [18, 128], strides = [1, 1]} : vector<20x128xbf16> to vector<18x128xbf16>
    %c0_3 = arith.constant 0 : index
    %c0_4 = arith.constant 0 : index
    %c0_5 = arith.constant 0 : index
    %4 = vector.load %arg3[%c0_3, %c0_4, %c0_5] : memref<3x128x128xbf16, #tpu.memory_space<vmem>>, vector<1x128x128xbf16>
    %5 = vector.shape_cast %4 : vector<1x128x128xbf16> to vector<128x128xbf16>
    %cst = arith.constant dense<0.000000e+00> : vector<18x128xf32>
    %6 = tpu.matmul %3, %5, %cst {dimension_numbers = #tpu.dot_dimension_numbers<[1], [0], [0], [1], [0, 0, 1, 1], [], []>} : vector<18x128xbf16>, vector<128x128xbf16>, vector<18x128xf32> -> vector<18x128xf32>
    %7 = vector.extract_strided_slice %2 {offsets = [1, 0], sizes = [18, 128], strides = [1, 1]} : vector<20x128xbf16> to vector<18x128xbf16>
    %c1 = arith.constant 1 : index
    %c0_6 = arith.constant 0 : index
    %c0_7 = arith.constant 0 : index
    %8 = vector.load %arg3[%c1, %c0_6, %c0_7] : memref<3x128x128xbf16, #tpu.memory_space<vmem>>, vector<1x128x128xbf16>
    %9 = vector.shape_cast %8 : vector<1x128x128xbf16> to vector<128x128xbf16>
    %cst_8 = arith.constant dense<0.000000e+00> : vector<18x128xf32>
    %10 = tpu.matmul %7, %9, %cst_8 {dimension_numbers = #tpu.dot_dimension_numbers<[1], [0], [0], [1], [0, 0, 1, 1], [], []>} : vector<18x128xbf16>, vector<128x128xbf16>, vector<18x128xf32> -> vector<18x128xf32>
    %11 = arith.addf %6, %10 : vector<18x128xf32>
    %12 = vector.extract_strided_slice %2 {offsets = [2, 0], sizes = [18, 128], strides = [1, 1]} : vector<20x128xbf16> to vector<18x128xbf16>
    %c2 = arith.constant 2 : index
    %c0_9 = arith.constant 0 : index
    %c0_10 = arith.constant 0 : index
    %13 = vector.load %arg3[%c2, %c0_9, %c0_10] : memref<3x128x128xbf16, #tpu.memory_space<vmem>>, vector<1x128x128xbf16>
    %14 = vector.shape_cast %13 : vector<1x128x128xbf16> to vector<128x128xbf16>
    %cst_11 = arith.constant dense<0.000000e+00> : vector<18x128xf32>
    %15 = tpu.matmul %12, %14, %cst_11 {dimension_numbers = #tpu.dot_dimension_numbers<[1], [0], [0], [1], [0, 0, 1, 1], [], []>} : vector<18x128xbf16>, vector<128x128xbf16>, vector<18x128xf32> -> vector<18x128xf32>
    %16 = arith.addf %11, %15 : vector<18x128xf32>
    %c0_12 = arith.constant 0 : index
    %c0_13 = arith.constant 0 : index
    %17 = vector.load %arg4[%c0_12, %c0_13] : memref<1x128xf32, #tpu.memory_space<vmem>>, vector<1x128xf32>
    %18 = vector.broadcast %17 : vector<1x128xf32> to vector<18x128xf32>
    %19 = arith.addf %16, %18 : vector<18x128xf32>
    %cst_14 = arith.constant 5.000000e-01 : f32
    %20 = vector.broadcast %cst_14 : f32 to vector<18x128xf32>
    %21 = arith.mulf %20, %19 : vector<18x128xf32>
    %cst_15 = arith.constant 0.707106769 : f32
    %22 = vector.broadcast %cst_15 : f32 to vector<18x128xf32>
    %23 = arith.mulf %19, %22 : vector<18x128xf32>
    %24 = math.erf %23 : vector<18x128xf32>
    %cst_16 = arith.constant 1.000000e+00 : f32
    %25 = vector.broadcast %cst_16 : f32 to vector<18x128xf32>
    %26 = arith.addf %25, %24 : vector<18x128xf32>
    %27 = arith.mulf %21, %26 : vector<18x128xf32>
    %c16_i32 = arith.constant 16 : i32
    %28 = arith.muli %arg1, %c16_i32 : i32
    %c1_i32 = arith.constant 1 : i32
    %29 = arith.subi %28, %c1_i32 : i32
    %30 = tpu.iota {dimensions = array<i32: 0>} : vector<18x1xi32>
    %31 = vector.broadcast %29 : i32 to vector<18x1xi32>
    %32 = arith.addi %31, %30 : vector<18x1xi32>
    %c0_i32 = arith.constant 0 : i32
    %33 = vector.broadcast %c0_i32 : i32 to vector<18x1xi32>
    %34 = arith.cmpi sge, %32, %33 : vector<18x1xi32>
    %c16_i32_17 = arith.constant 16 : i32
    %35 = vector.broadcast %c16_i32_17 : i32 to vector<18x1xi32>
    %36 = arith.cmpi slt, %32, %35 : vector<18x1xi32>
    %37 = arith.andi %34, %36 : vector<18x1xi1>
    %cst_18 = arith.constant 0.000000e+00 : f32
    %38 = vector.shape_cast %37 : vector<18x1xi1> to vector<18x1xi1>
    %39 = vector.broadcast %38 : vector<18x1xi1> to vector<18x128xi1>
    %40 = vector.broadcast %cst_18 : f32 to vector<18x128xf32>
    %41 = arith.select %39, %27, %40 : vector<18x128xi1>, vector<18x128xf32>
    %42 = arith.truncf %41 : vector<18x128xf32> to vector<18x128xbf16>
    %43 = vector.extract_strided_slice %42 {offsets = [0, 0], sizes = [16, 128], strides = [1, 1]} : vector<18x128xbf16> to vector<16x128xbf16>
    %c0_19 = arith.constant 0 : index
    %c0_20 = arith.constant 0 : index
    %c0_21 = arith.constant 0 : index
    %44 = vector.load %arg5[%c0_19, %c0_20, %c0_21] : memref<3x128x128xbf16, #tpu.memory_space<vmem>>, vector<1x128x128xbf16>
    %45 = vector.shape_cast %44 : vector<1x128x128xbf16> to vector<128x128xbf16>
    %cst_22 = arith.constant dense<0.000000e+00> : vector<16x128xf32>
    %46 = tpu.matmul %43, %45, %cst_22 {dimension_numbers = #tpu.dot_dimension_numbers<[1], [0], [0], [1], [0, 0, 1, 1], [], []>} : vector<16x128xbf16>, vector<128x128xbf16>, vector<16x128xf32> -> vector<16x128xf32>
    %47 = vector.extract_strided_slice %42 {offsets = [1, 0], sizes = [16, 128], strides = [1, 1]} : vector<18x128xbf16> to vector<16x128xbf16>
    %c1_23 = arith.constant 1 : index
    %c0_24 = arith.constant 0 : index
    %c0_25 = arith.constant 0 : index
    %48 = vector.load %arg5[%c1_23, %c0_24, %c0_25] : memref<3x128x128xbf16, #tpu.memory_space<vmem>>, vector<1x128x128xbf16>
    %49 = vector.shape_cast %48 : vector<1x128x128xbf16> to vector<128x128xbf16>
    %cst_26 = arith.constant dense<0.000000e+00> : vector<16x128xf32>
    %50 = tpu.matmul %47, %49, %cst_26 {dimension_numbers = #tpu.dot_dimension_numbers<[1], [0], [0], [1], [0, 0, 1, 1], [], []>} : vector<16x128xbf16>, vector<128x128xbf16>, vector<16x128xf32> -> vector<16x128xf32>
    %51 = arith.addf %46, %50 : vector<16x128xf32>
    %52 = vector.extract_strided_slice %42 {offsets = [2, 0], sizes = [16, 128], strides = [1, 1]} : vector<18x128xbf16> to vector<16x128xbf16>
    %c2_27 = arith.constant 2 : index
    %c0_28 = arith.constant 0 : index
    %c0_29 = arith.constant 0 : index
    %53 = vector.load %arg5[%c2_27, %c0_28, %c0_29] : memref<3x128x128xbf16, #tpu.memory_space<vmem>>, vector<1x128x128xbf16>
    %54 = vector.shape_cast %53 : vector<1x128x128xbf16> to vector<128x128xbf16>
    %cst_30 = arith.constant dense<0.000000e+00> : vector<16x128xf32>
    %55 = tpu.matmul %52, %54, %cst_30 {dimension_numbers = #tpu.dot_dimension_numbers<[1], [0], [0], [1], [0, 0, 1, 1], [], []>} : vector<16x128xbf16>, vector<128x128xbf16>, vector<16x128xf32> -> vector<16x128xf32>
    %56 = arith.addf %51, %55 : vector<16x128xf32>
    %c0_31 = arith.constant 0 : index
    %c0_32 = arith.constant 0 : index
    %57 = vector.load %arg6[%c0_31, %c0_32] : memref<1x128xf32, #tpu.memory_space<vmem>>, vector<1x128xf32>
    %58 = vector.broadcast %57 : vector<1x128xf32> to vector<16x128xf32>
    %59 = arith.addf %56, %58 : vector<16x128xf32>
    %cst_33 = arith.constant 5.000000e-01 : f32
    %60 = vector.broadcast %cst_33 : f32 to vector<16x128xf32>
    %61 = arith.mulf %60, %59 : vector<16x128xf32>
    %cst_34 = arith.constant 0.707106769 : f32
    %62 = vector.broadcast %cst_34 : f32 to vector<16x128xf32>
    %63 = arith.mulf %59, %62 : vector<16x128xf32>
    %64 = math.erf %63 : vector<16x128xf32>
    %cst_35 = arith.constant 1.000000e+00 : f32
    %65 = vector.broadcast %cst_35 : f32 to vector<16x128xf32>
    %66 = arith.addf %65, %64 : vector<16x128xf32>
    %67 = arith.mulf %61, %66 : vector<16x128xf32>
    %68 = vector.extract_strided_slice %2 {offsets = [2, 0], sizes = [16, 128], strides = [1, 1]} : vector<20x128xbf16> to vector<16x128xbf16>
    %c0_36 = arith.constant 0 : index
    %c0_37 = arith.constant 0 : index
    %69 = vector.load %arg7[%c0_36, %c0_37] : memref<128x128xbf16, #tpu.memory_space<vmem>>, vector<128x128xbf16>
    %cst_38 = arith.constant dense<0.000000e+00> : vector<16x128xf32>
    %70 = tpu.matmul %68, %69, %cst_38 {dimension_numbers = #tpu.dot_dimension_numbers<[1], [0], [0], [1], [0, 0, 1, 1], [], []>} : vector<16x128xbf16>, vector<128x128xbf16>, vector<16x128xf32> -> vector<16x128xf32>
    %71 = arith.addf %67, %70 : vector<16x128xf32>
    %c0_39 = arith.constant 0 : index
    %c0_40 = arith.constant 0 : index
    %72 = vector.load %arg8[%c0_39, %c0_40] : memref<1x128xf32, #tpu.memory_space<vmem>>, vector<1x128xf32>
    %73 = vector.broadcast %72 : vector<1x128xf32> to vector<16x128xf32>
    %74 = arith.addf %71, %73 : vector<16x128xf32>
    %75 = tpu.iota {dimensions = array<i32: 1>} : vector<16x128xi32>
    %c8_i32 = arith.constant 8 : i32
    %76 = vector.broadcast %c8_i32 : i32 to vector<16x128xi32>
    %77 = arith.cmpi slt, %75, %76 : vector<16x128xi32>
    %78 = arith.extui %77 : vector<16x128xi1> to vector<16x128xi32>
    %79 = arith.sitofp %78 : vector<16x128xi32> to vector<16x128xf32>
    %cst_41 = arith.constant dense<0.000000e+00> : vector<16xf32>
    %80 = vector.multi_reduction <add>, %74, %cst_41 [1] : vector<16x128xf32> to vector<16xf32>
    %81 = vector.shape_cast %80 : vector<16xf32> to vector<16x1xf32>
    %cst_42 = arith.constant 1.250000e-01 : f32
    %82 = vector.broadcast %cst_42 : f32 to vector<16x1xf32>
    %83 = arith.mulf %81, %82 : vector<16x1xf32>
    %84 = vector.broadcast %83 : vector<16x1xf32> to vector<16x128xf32>
    %85 = arith.subf %74, %84 : vector<16x128xf32>
    %86 = arith.mulf %85, %79 : vector<16x128xf32>
    %87 = arith.mulf %86, %86 : vector<16x128xf32>
    %cst_43 = arith.constant dense<0.000000e+00> : vector<16xf32>
    %88 = vector.multi_reduction <add>, %87, %cst_43 [1] : vector<16x128xf32> to vector<16xf32>
    %89 = vector.shape_cast %88 : vector<16xf32> to vector<16x1xf32>
    %cst_44 = arith.constant 1.250000e-01 : f32
    %90 = vector.broadcast %cst_44 : f32 to vector<16x1xf32>
    %91 = arith.mulf %89, %90 : vector<16x1xf32>
    %cst_45 = arith.constant 9.99999974E-6 : f32
    %92 = vector.broadcast %cst_45 : f32 to vector<16x1xf32>
    %93 = arith.addf %91, %92 : vector<16x1xf32>
    %94 = math.rsqrt %93 : vector<16x1xf32>
    %95 = vector.broadcast %94 : vector<16x1xf32> to vector<16x128xf32>
    %96 = arith.mulf %86, %95 : vector<16x128xf32>
    %c0_46 = arith.constant 0 : index
    %c0_47 = arith.constant 0 : index
    %97 = vector.load %arg9[%c0_46, %c0_47] : memref<1x128xf32, #tpu.memory_space<vmem>>, vector<1x128xf32>
    %98 = vector.broadcast %97 : vector<1x128xf32> to vector<16x128xf32>
    %99 = arith.mulf %96, %98 : vector<16x128xf32>
    %c0_48 = arith.constant 0 : index
    %c0_49 = arith.constant 0 : index
    %100 = vector.load %arg10[%c0_48, %c0_49] : memref<1x128xf32, #tpu.memory_space<vmem>>, vector<1x128xf32>
    %101 = vector.broadcast %100 : vector<1x128xf32> to vector<16x128xf32>
    %102 = arith.addf %99, %101 : vector<16x128xf32>
    %c0_50 = arith.constant 0 : index
    %c0_51 = arith.constant 0 : index
    %c0_52 = arith.constant 0 : index
    %103 = vector.load %arg11[%c0_50, %c0_51, %c0_52] : memref<1x16x128xf32, #tpu.memory_space<vmem>>, vector<1x16x128xf32>
    %104 = vector.shape_cast %103 : vector<1x16x128xf32> to vector<16x128xf32>
    %105 = vector.shape_cast %102 : vector<16x128xf32> to vector<1x16x128xf32>
    tpu.vector_store %arg11[%c0_50, %c0_51, %c0_52], %105 {strides = array<i32>} : memref<1x16x128xf32, #tpu.memory_space<vmem>>, vector<1x16x128xf32>,
    return
  }
  func.func @transform_0(%arg0: i32, %arg1: i32) -> (i32, i32, i32, i32) {
    %c0_i32 = arith.constant 0 : i32
    %c0_i32_0 = arith.constant 0 : i32
    %c0_i32_1 = arith.constant 0 : i32
    return %arg0, %arg1, %c0_i32, %c0_i32_0 : i32, i32, i32, i32
  }
  func.func @transform_1(%arg0: i32, %arg1: i32) -> (i32, i32, i32) {
    %c0_i32 = arith.constant 0 : i32
    %c0_i32_0 = arith.constant 0 : i32
    %c0_i32_1 = arith.constant 0 : i32
    %c0_i32_2 = arith.constant 0 : i32
    return %c0_i32, %c0_i32_0, %c0_i32_1 : i32, i32, i32
  }
  func.func @transform_2(%arg0: i32, %arg1: i32) -> (i32, i32) {
    %c0_i32 = arith.constant 0 : i32
    %c0_i32_0 = arith.constant 0 : i32
    %c0_i32_1 = arith.constant 0 : i32
    return %c0_i32, %c0_i32_0 : i32, i32
  }
  func.func @transform_3(%arg0: i32, %arg1: i32) -> (i32, i32, i32) {
    %c0_i32 = arith.constant 0 : i32
    %c0_i32_0 = arith.constant 0 : i32
    %c0_i32_1 = arith.constant 0 : i32
    %c0_i32_2 = arith.constant 0 : i32
    return %c0_i32, %c0_i32_0, %c0_i32_1 : i32, i32, i32
  }
  func.func @transform_4(%arg0: i32, %arg1: i32) -> (i32, i32) {
    %c0_i32 = arith.constant 0 : i32
    %c0_i32_0 = arith.constant 0 : i32
    %c0_i32_1 = arith.constant 0 : i32
    return %c0_i32, %c0_i32_0 : i32, i32
  }
  func.func @transform_5(%arg0: i32, %arg1: i32) -> (i32, i32) {
    %c0_i32 = arith.constant 0 : i32
    %c0_i32_0 = arith.constant 0 : i32
    %c0_i32_1 = arith.constant 0 : i32
    return %c0_i32, %c0_i32_0 : i32, i32
  }
  func.func @transform_6(%arg0: i32, %arg1: i32) -> (i32, i32) {
    %c0_i32 = arith.constant 0 : i32
    %c0_i32_0 = arith.constant 0 : i32
    %c0_i32_1 = arith.constant 0 : i32
    return %c0_i32, %c0_i32_0 : i32, i32
  }
  func.func @transform_7(%arg0: i32, %arg1: i32) -> (i32, i32) {
    %c0_i32 = arith.constant 0 : i32
    %c0_i32_0 = arith.constant 0 : i32
    %c0_i32_1 = arith.constant 0 : i32
    return %c0_i32, %c0_i32_0 : i32, i32
  }
  func.func @transform_8(%arg0: i32, %arg1: i32) -> (i32, i32) {
    %c0_i32 = arith.constant 0 : i32
    %c0_i32_0 = arith.constant 0 : i32
    %c0_i32_1 = arith.constant 0 : i32
    return %c0_i32, %c0_i32_0 : i32, i32
  }
  func.func @transform_9(%arg0: i32, %arg1: i32) -> (i32, i32, i32) {
    %c0_i32 = arith.constant 0 : i32
    %c0_i32_0 = arith.constant 0 : i32
    return %arg0, %arg1, %c0_i32 : i32, i32, i32
  }
}

</mosaic_0001>

<bundles_post_ra>
// kernel: tpu_custom_call.1
= control target key start
LH: loop header
LB: loop body
LE: loop exit
PB: predicated region body
PF: predicated region fallthrough
CT: control target
= control target key end

     0   :  { %14 = vsyncpa [#allocation3], 0  ;;  %s2352_s0 = inlined_call_operand.vmem [shape: f32[2,1,20,128], index: 0, kind: input, shape index: {}]   ;;  %s2353_s1 = inlined_call_operand.hbm [shape: bf16[3,128,128], index: 1, kind: input, shape index: {}]   ;;  %s2354_s2 = inlined_call_operand.vmem [shape: f32[1,128], index: 2, kind: input, shape index: {}]   ;;  %s2355_s3 = inlined_call_operand.hbm [shape: bf16[3,128,128], index: 3, kind: input, shape index: {}]   ;;  %s2356_s4 = inlined_call_operand.vmem [shape: f32[1,128], index: 4, kind: input, shape index: {}]   ;;  %s2357_s5 = inlined_call_operand.vmem [shape: bf16[128,128], index: 5, kind: input, shape index: {}]   ;;  %s2358_s6 = inlined_call_operand.vmem [shape: f32[1,128], index: 6, kind: input, shape index: {}]   ;;  %s2359_s7 = inlined_call_operand.vmem [shape: f32[1,128], index: 7, kind: input, shape index: {}]   ;;  %s2360_s8 = inlined_call_operand.vmem [shape: f32[1,128], index: 8, kind: input, shape index: {}]   ;;  %s2361_s9 = inlined_call_operand.hbm [shape: f32[2,16,128], index: 9, kind: output, shape index: {}]  }
   0x1   :  { %15 = vsyncpa [#allocation6], 0 }
   0x2   :  { %16 = vsyncpa [#allocation4], 0 }
   0x3   :  { %18 = vsyncpa [#allocation4 + $0x1], 0  ;;  %s2100_s30 = smov 0   ;;  %s2102_s10 = smov 0  }
   0x4   :  { %s2104_s11 = smov 0   ;;  %s2106_s12 = smov 0  }
   0x5   :  { %s2108_s13 = smov 0   ;;  %s2110_s14 = smov 0  }
   0x6 LB: > { %s1460_s15 = sadd.s32 4294967295, %s2038_s14   ;;  %s1461_s16 = sadd.s32 4294967294, %s2038_s14   ;;  %s2038_s14 = sphi %s2110_s14, %s24_s14   ;;  %s2034_s13 = sphi %s2108_s13, %s2377_s13   ;;  %s2030_s12 = sphi %s2106_s12, %s2376_s12   ;;  %s2026_s11 = sphi %s2104_s11, %s2375_s11   ;;  %s2022_s10 = sphi %s2102_s10, %s2374_s10   ;;  %s2018_s30 = sphi %s2100_s30, %s2373_s30  }
   0x7   : > { %s36_s17 = sadd.s32 1, %s2034_s13  ;;  %s241_s18 = sadd.s32 1, %s2026_s11 }
   0x8   : > { %p38_p0 = scmp.ge.s32.totalorder %s36_s17, 2  ;;  %p251_p1 = scmp.ne.s32.totalorder %s2026_s11, %s2022_s10 }
   0x9   : > { %p252_p2 = scmp.eq.s32.totalorder %s1460_s15, 1  ;;  %p257_p3 = scmp.ne.s32.totalorder %s2022_s10, %s2018_s30 }
   0xa   : > { %s2379_s17 = smov (%p38_p0, %s36_s17), 0  ;;  %p258_p5 = scmp.eq.s32.totalorder %s1461_s16, 1 }
   0xb   : > { %2364 = sst [smem:[#allocation11_spill]] %s2379_s17  ;;  %p2140_p4 = por %p252_p2, %p251_p1 }
   0xc   : > { %s236_s20 = ssub.s32 %s2034_s13, %s2379_s17  ;;  %p1462_p6 = scmp.ge.s32.totalorder %s2038_s14, 1 }
   0xd   : > { %s2365_s19 = scalar_select %p2140_p4, 1, 0 }
   0xe   : > { %p239_p7 = scmp.eq.s32.totalorder %s236_s20, 0  ;;  %p2147_p8 = por %p258_p5, %p257_p3 }
   0xf   : > { %p265_p9 = scmp.lt.s32.totalorder %s2038_s14, 3  ;;  %p2159_p11 = scmp.eq.s32.totalorder %s1460_s15, 0 }
  0x10   : > { %s2366_s21 = scalar_select %p2147_p8, 1, 0 }
  0x11   : > { %s2153_s22 = scalar_select %p239_p7, %s2026_s11, %s241_s18  }
  0x12   : > { %p2155_p10 = pnand %p1462_p6, %p265_p9  ;;  %s2040_s25 = smov [#allocation2]  }
  0x13   : > { %s277_s26 = sshll.u32 %s2040_s25, 4  ;;  %s2041_s28 = smov [#allocation5]   ;;  %s278_s26 = int_to_ptr.vmem [resolvable:$true] %s277_s26 }
  0x14   : > { %p1759_p12 = pneg %p2155_p10  ;;  %s293_s29 = sshll.u32 %s2041_s28, 4  ;;  %s294_s29 = int_to_ptr.vmem [resolvable:$true] %s293_s29 }
  0x15   : > { %s1913_s15 = scalar_lea.vmem %s278_s26, 3072  ;;  %p1921_p5 = scmp.lt.s32.totalorder %s278_s26, %s278_s26 }
  0x16   : > { %p2167_p13 = pnand %p2159_p11, %p1759_p12  ;;  %p1914_p1 = scmp.ne.s32.totalorder %s278_s26, %s1913_s15 }
  0x17   : > { %p1922_p6 = scmp.lt.s32.totalorder %s1913_s15, %s1913_s15 }
  0x18   : > { %p1904_p0 = pneg %p2167_p13 }
  0x19   : > { %p1923_p7 = por %p1922_p6, %p1921_p5 }
  0x1a   : > { %p1916_p2 = pnand %p1914_p1, %p1904_p0 }
  0x1c   : > { %p1917_p3 = pneg %p1916_p2 }
  0x1e   : > { %p1924_p9 = pnand %p1923_p7, %p1917_p3 }
  0x20   : > { %1927 = shalt.err (!%p1924_p9)
}
  0x21   : > { %s2042_s16 = smov 64   ;;  %s2043_s18 = smov 4  }
  0x22   : > { %1762 = dma.hbm_to_vmem [thread:$0]  (!%p2167_p13), %s2353_s1, 3072, %s278_s26, [#allocation3], %s2042_s16, %s2042_s16, %s2043_s18  }
  0x23   : > { %s1939_s28 = scalar_lea.vmem %s294_s29, 3072  ;;  %p1947_p8 = scmp.lt.s32.totalorder %s294_s29, %s294_s29 }
  0x24   : > { %p1940_p12 = scmp.ne.s32.totalorder %s294_s29, %s1939_s28  ;;  %p1948_p4 = scmp.lt.s32.totalorder %s1939_s28, %s1939_s28 }
  0x26   : > { %p1942_p1 = pnand %p1940_p12, %p1904_p0  ;;  %p1949_p5 = por %p1948_p4, %p1947_p8 }
  0x28   : > { %p1943_p2 = pneg %p1942_p1 }
  0x2a   : > { %p1950_p3 = pnand %p1949_p5, %p1943_p2 }
  0x2c   : > { %1953 = shalt.err (!%p1950_p3)
}
  0x2d   : > { %1765 = dma.hbm_to_vmem [thread:$0]  (!%p2167_p13), %s2355_s3, 3072, %s294_s29, [#allocation6], %s2042_s16, %s2042_s16, %s2043_s18  }
  0x2e   : > { %336 = sbr.rel (%p2155_p10) target bundleno = 930 (0x3a2), region = 56 }
  0x33   : > { %2005 = dma.done.wait (%p2159_p11), [#allocation3], 3072  }
  0x34   : > { %2007 = vsyncadd (%p2159_p11), [#allocation3], 4294964224 }
  0x35   : > { %2009 = dma.done.wait (%p2159_p11), [#allocation6], 3072  }
  0x36   : > { %2011 = vsyncadd (%p2159_p11), [#allocation6], 4294964224  ;;  %v1832_v0 = vld [vmem:[#allocation2 + $0x78] sm:$0xff]   ;;  %p380_p4 = scmp.lt.s32.totalorder %s2030_s12, 1  ;;  %v1834_v2 = vld [vmem:[#allocation2 + $0x70] sm:$0xff]   ;;  %vm658_vm1 = vcmask 1046528  }
  0x37   : > { %v1833_v1 = vld [vmem:[#allocation2 + $0x38] sm:$0xff]   ;;  %1608 = vmatprep.subr.bf16.mxu0 %v1832_v0  ;;  %v1835_v3 = vld [vmem:[#allocation2 + $0x30] sm:$0xff]   ;;  %v1836_v4 = vld [vmem:[#allocation2 + $0x68] sm:$0xff]   ;;  %vm429_vm0 = vsmask.f32 7424  ;;  %v2044_v42 = vmov 0.0  }
  0x38   : > { %1628 = vmatprep.subr.bf16.mxu1 %v1833_v1  ;;  %1609 = vmatpush3.bf16.msra.mxu0 %v1832_v0  ;;  %v1837_v5 = vld [vmem:[#allocation2 + $0x28] sm:$0xff]   ;;  %s381_s17 = scalar_select %p380_p4, %s2030_s12, 1  ;;  %v1838_v6 = vld [vmem:[#allocation2 + $0x60] sm:$0xff]   ;;  %v1840_v8 = vld [vmem:[#allocation2 + $0x58] sm:$0xff]   ;;  %vm2045_vm2 = vmmov 0   ;;  %vm2046_vm5 = vmmov 1  }
  0x39   : > { %1629 = vmatpush3.bf16.msra.mxu1 %v1833_v1  ;;  %1610 = vmatprep.subr.bf16.mxu0 %v1834_v2  ;;  %v1839_v7 = vld [vmem:[#allocation2 + $0x20] sm:$0xff]   ;;  %v1841_v9 = vld [vmem:[#allocation2 + $0x18] sm:$0xff]   ;;  %v1842_v10 = vld [vmem:[#allocation2 + $0x50] sm:$0xff]   ;;  %s377_s26 = sand.u32 1, %s2022_s10   ;;  %s1541_s25 = sshll.u32 %s2030_s12, 8 }
  0x3a   : > { %1630 = vmatprep.subr.bf16.mxu1 %v1835_v3  ;;  %s1748_s23 = smul.u32 24, %s381_s17  ;;  %v1843_v14 = vld [vmem:[#allocation2 + $0x10] sm:$0xff]   ;;  %v1844_v20 = vld [vmem:[#allocation2 + $0x48] sm:$0xff]   ;;  %v1846_v24 = vld [vmem:[#allocation2 + $0x40] sm:$0xff]   ;;  %s1469_s16 = sshll.u32 %s377_s26, 4 }
  0x3b   : > { %v1845_v21 = vld [vmem:[#allocation2 + $0x8] sm:$0xff]   ;;  %v1847_v26 = vld [vmem:[#allocation2] sm:$0xff]   ;;  %v1848_v31 = vld [vmem:[#allocation2 + $0xb8] sm:$0xff]   ;;  %s379_s28 = scalar_lea.vmem [#allocation7], %s1469_s16  ;;  %s2303_s24 = scalar_lea.hbm %s2361_s9, %s1541_s25 }
  0x3c   : > { %1611 = vmatpush3.bf16.msra.mxu0 %v1834_v2  ;;  %s388_s27 = scalar_lea.vmem %s2352_s0, %s1748_s23  ;;  %v1849_v33 = vld [vmem:[#allocation2 + $0xb0] sm:$0xff]   ;;  %v1850_v35 = vld [vmem:[#allocation2 + $0xa8] sm:$0xff]   ;;  %v1851_v36 = vld [vmem:[#allocation2 + $0xa0] sm:$0xff]   ;;  %s1356_s15 = sshll.u32 %s379_s28, 4  ;;  %s2305_s15 = int_to_ptr.vmem [resolvable:$true] %s1356_s15 }
  0x3d   : > { %1631 = vmatpush3.bf16.msra.mxu1 %v1835_v3  ;;  %1612 = vmatprep.subr.bf16.mxu0 %v1836_v4  ;;  %v391_v11 = vld [vmem:[%s388_s27] sm:$0xff]  ;;  %v392_v12 = vld [vmem:[%s388_s27 + $0x8] sm:$0xff]  ;;  %v393_v13 = vld [vmem:[%s388_s27 + $0x10] sm:$0xf]  ;;  %s2307_s27 = scalar_lea.sflag [#allocation4], %s377_s26  ;;  %s1954_s29 = scalar_lea.vmem %s2305_s15, 256 }
  0x3e   : > { %1632 = vmatprep.subr.bf16.mxu1 %v1837_v5  ;;  %v394_v15 = vpack.c.bf16 %v392_v12, %v391_v11  ;;  %v395_v16 = vpack.c.bf16 %v393_v13, %v393_v13  ;;  %v1852_v37 = vld [vmem:[#allocation2 + $0x98] sm:$0xff]   ;;  %v1853_v38 = vld [vmem:[#allocation2 + $0x90] sm:$0xff]   ;;  %v1854_v39 = vld [vmem:[#allocation2 + $0x88] sm:$0xff]   ;;  %p1955_p8 = scmp.ne.s32.totalorder %s2305_s15, %s1954_s29  ;;  %p2370_p10 = scmp.ne.s32.totalorder %s2365_s19, 0 }
  0x3f   : > { %v1855_v40 = vld [vmem:[#allocation2 + $0x80] sm:$0xff]   ;;  %v1856_v41 = vld [vmem:[#allocation5 + $0x38] sm:$0xff]   ;;  %v1857_v43 = vld [vmem:[#allocation5 + $0x30] sm:$0xff]   ;;  %s2047_s12 = smov [#allocation7]  }
  0x40   : > { %1613 = vmatpush3.bf16.msra.mxu0 %v1836_v4  ;;  %v431_v17 = vshrl.u32 %v394_v15, 16  ;;  %v433_v18 = vshll.u32 %v394_v15, 16  ;;  %v438_v19 = vshll.u32 %v395_v16, 16  ;;  %1644 = vmatprep.mubr.bf16.mxu1 %v394_v15  ;;  %v442_v27 = vshrl.u32 %v395_v16, 16  ;;  %v1858_v44 = vld [vmem:[#allocation5 + $0x78] sm:$0xff]   ;;  %v1859_v45 = vld [vmem:[#allocation5 + $0x28] sm:$0xff]   ;;  %p1956_p11 = pnand %p1955_p8, %p2370_p10 }
  0x41   : > { %1633 = vmatpush3.bf16.msra.mxu1 %v1837_v5  ;;  %1614 = vmatprep.subr.bf16.mxu0 %v1838_v6  ;;  %v659_v29 = vrot.slane %v394_v15, 1  ;;  %v660_v30 = vrot.slane %v395_v16, 1  ;;  %v1860_v46 = vld [vmem:[#allocation5 + $0x70] sm:$0xff]   ;;  %v1861_v47 = vld [vmem:[#allocation5 + $0x20] sm:$0xff]   ;;  %v1862_v48 = vld [vmem:[#allocation5 + $0x68] sm:$0xff]   ;;  %v790_v15 = vlaneseq  ;;  %s1958_s16 = sshll.u32 %s2047_s12, 4  ;;  %s1959_s16 = int_to_ptr.vmem [resolvable:$false] %s1958_s16 }
  0x42   : > { %1634 = vmatprep.subr.bf16.mxu1 %v1839_v7  ;;  %v435_v22 = vrot.slane %v433_v18, 1  ;;  %v440_v23 = vrot.slane %v438_v19, 1  ;;  %v1863_v49 = vld [vmem:[#allocation5 + $0x18] sm:$0xff]   ;;  %v1864_v50 = vld [vmem:[#allocation5 + $0x60] sm:$0xff]   ;;  %v1865_v51 = vld [vmem:[#allocation5 + $0x10] sm:$0xff]   ;;  %p1957_p13 = pneg %p1956_p11  ;;  %s1960_s18 = scalar_lea.vmem %s1959_s16, 512 }
  0x43   : > { %v2206_v34 = vsel %vm658_vm1, %v659_v29, %v660_v30  ;;  %v1866_v52 = vld [vmem:[#allocation5 + $0x58] sm:$0xff]   ;;  %v1867_v53 = vld [vmem:[#allocation5 + $0x8] sm:$0xff]   ;;  %v1868_v54 = vld [vmem:[#allocation5 + $0x50] sm:$0xff]   ;;  %v791_v19 = vshrl.u32 %v790_v15, 7  ;;  %p1961_p0 = scmp.lt.s32.totalorder %s2305_s15, %s1959_s16  ;;  %p1962_p6 = scmp.lt.s32.totalorder %s1960_s18, %s1954_s29 }
  0x44   : > { %1615 = vmatpush3.bf16.msra.mxu0 %v1838_v6  ;;  %v436_v25 = vor.u32 %v435_v22, %v431_v17  ;;  %v444_v32 = vor.u32 %v442_v27, %v440_v23  ;;  %v1869_v55 = vld [vmem:[#allocation5] sm:$0xff]   ;;  %v1870_v56 = vld [vmem:[#allocation5 + $0x48] sm:$0xff]  }
  0x45   : > { %1635 = vmatpush3.bf16.msra.mxu1 %v1839_v7  ;;  %1616 = vmatprep.subr.bf16.mxu0 %v1840_v8  ;;  %v1871_v57 = vld [vmem:[#allocation5 + $0x40] sm:$0xff]   ;;  %v795_v29 = vadd.s32 4294967295, %v791_v19  ;;  %p1963_p7 = por %p1962_p6, %p1961_p0 }
  0x46   : > { %1636 = vmatprep.subr.bf16.mxu1 %v1841_v9  ;;  %v441_v28 = vsel %vm429_vm0, %v436_v25, %v440_v23  ;;  %v1495_v3 = vld [vmem:[%s2354_s2] ss:$0 sm:$0xff] }
  0x47   : > { %1624 = vmatprep.mubr.bf16.mxu0 %v441_v28  ;;  %vm798_vm4 = vcmp.ge.s32.totalorder %v795_v29, 0  ;;  %p1964_p9 = pnand %p1963_p7, %p1957_p13 }
  0x48   : > { %1617 = vmatpush3.bf16.msra.mxu0 %v1840_v8  ;;  %vm1512_vm6 = vmpackc.low %vm2046_vm5, %vm798_vm4 }
  0x49   : > { %1637 = vmatpush3.bf16.msra.mxu1 %v1841_v9  ;;  %1618 = vmatprep.subr.bf16.mxu0 %v1842_v10 }
  0x4a   : > { %1638 = vmatprep.subr.bf16.mxu1 %v1843_v14 }
  0x4c   : > { %1619 = vmatpush3.bf16.msra.mxu0 %v1842_v10 }
  0x4d   : > { %1639 = vmatpush3.bf16.msra.mxu1 %v1843_v14  ;;  %1620 = vmatprep.subr.bf16.mxu0 %v1844_v20 }
  0x4e   : > { %1640 = vmatprep.subr.bf16.mxu1 %v1845_v21 }
  0x50   : > { %1621 = vmatpush3.bf16.msra.mxu0 %v1844_v20 }
  0x51   : > { %1641 = vmatpush3.bf16.msra.mxu1 %v1845_v21  ;;  %1622 = vmatprep.subr.bf16.mxu0 %v1846_v24  ;;  %v793_v21 = vadd.s32 16, %v791_v19  ;;  %v1523_v19 = vld [vmem:[%s2356_s4] ss:$0 sm:$0xff] }
  0x52   : > { %1642 = vmatprep.subr.bf16.mxu1 %v1847_v26 }
  0x53   : > { %v797_v22 = vadd.s32 4294967295, %v793_v21 }
  0x54   : > { %1623 = vmatpush3.bf16.msra.mxu0 %v1846_v24 }
  0x55   : > { %1643 = vmatpush3.bf16.msra.mxu1 %v1847_v26  ;;  %1648 = vmatprep.subr.bf16.mxu0 %v1848_v31  ;;  %vm803_vm3 = vcmp.lt.s32.totalorder %v797_v22, 16 }
  0x56   : > { %1668 = vmatprep.subr.bf16.mxu1 %v2044_v42 }
  0x57   : > { %1625 = vmatmul.mubr.bf16.vlgmr.msra.gmra.mxu0 %v444_v32 }
  0x58   : > { %1645 = vmatmul.mubr.bf16.vlgmr.msra.gmra.mxu1 %v395_v16  ;;  %1649 = vmatpush3.bf16.msra.mxu0 %v1848_v31 }
  0x59   : > { %1650 = vmatprep.subr.bf16.mxu0 %v1849_v33  ;;  %1664 = vmatprep.mubr.bf16.mxu0 %v2206_v34 }
  0x5a   : > { %1669 = vmatpush3.bf16.msra.mxu1 %v1858_v44  ;;  %1684 = vmatprep.mubr.msk.bf16.mxu1 %vm2045_vm2, %v2044_v42 }
  0x5b   : > { %1670 = vmatprep.subr.bf16.mxu1 %v2044_v42 }
  0x5c   : > { %1651 = vmatpush3.bf16.msra.mxu0 %v1849_v33 }
  0x5d   : > { %1652 = vmatprep.subr.bf16.mxu0 %v1850_v35 }
  0x5e   : > { %1671 = vmatpush3.bf16.msra.mxu1 %v1860_v46  ;;  %v1879_v46 = vld [vmem:[%s2357_s5 + $0x30] sm:$0xff]  }
  0x5f   : > { %1672 = vmatprep.subr.bf16.mxu1 %v2044_v42 }
  0x60   : > { %1653 = vmatpush3.bf16.msra.mxu0 %v1850_v35 }
  0x61   : > { %1654 = vmatprep.subr.bf16.mxu0 %v1851_v36 }
  0x62   : > { %1673 = vmatpush3.bf16.msra.mxu1 %v1862_v48 }
  0x63   : > { %1674 = vmatprep.subr.bf16.mxu1 %v2044_v42 }
  0x64   : > { %1655 = vmatpush3.bf16.msra.mxu0 %v1851_v36 }
  0x65   : > { %1656 = vmatprep.subr.bf16.mxu0 %v1852_v37 }
  0x66   : > { %1675 = vmatpush3.bf16.msra.mxu1 %v1864_v50 }
  0x67   : > { %1676 = vmatprep.subr.bf16.mxu1 %v2044_v42 }
  0x68   : > { %1657 = vmatpush3.bf16.msra.mxu0 %v1852_v37 }
  0x69   : > { %1658 = vmatprep.subr.bf16.mxu0 %v1853_v38 }
  0x6a   : > { %1677 = vmatpush3.bf16.msra.mxu1 %v1866_v52  ;;  %v1881_v52 = vld [vmem:[%s2357_s5 + $0x28] sm:$0xff]  }
  0x6b   : > { %1678 = vmatprep.subr.bf16.mxu1 %v2044_v42 }
  0x6c   : > { %1659 = vmatpush3.bf16.msra.mxu0 %v1853_v38 }
  0x6d   : > { %1660 = vmatprep.subr.bf16.mxu0 %v1854_v39 }
  0x6e   : > { %1679 = vmatpush3.bf16.msra.mxu1 %v1868_v54  ;;  %v1873_v54 = vld [vmem:[#allocation5 + $0xb0] sm:$0xff]  }
  0x6f   : > { %1680 = vmatprep.subr.bf16.mxu1 %v2044_v42 }
  0x70   : > { %1661 = vmatpush3.bf16.msra.mxu0 %v1854_v39 }
  0x71   : > { %1662 = vmatprep.subr.bf16.mxu0 %v1855_v40 }
  0x72   : > { %1681 = vmatpush3.bf16.msra.mxu1 %v1870_v56  ;;  %v1874_v56 = vld [vmem:[#allocation5 + $0xa8] sm:$0xff]  }
  0x73   : > { %1682 = vmatprep.subr.bf16.mxu1 %v2044_v42 }
  0x74   : > { %1663 = vmatpush3.bf16.msra.mxu0 %v1855_v40  ;;  %v1877_v40 = vld [vmem:[%s2357_s5 + $0x38] sm:$0xff]  }
  0x75   : > { %1688 = vmatprep.subr.bf16.mxu0 %v2044_v42 }
  0x76   : > { %1683 = vmatpush3.bf16.msra.mxu1 %v1871_v57  ;;  %v1884_v57 = vld [vmem:[%s2357_s5 + $0x18] sm:$0xff]  }
  0x77   : > { %1665 = vmatmul.mubr.bf16.vlgmr.msra.gmra.mxu0 %v660_v30  ;;  %1708 = vmatprep.subr.bf16.mxu1 %v2044_v42 }
  0x78   : > { %1689 = vmatpush3.bf16.msra.mxu0 %v1856_v41  ;;  %1704 = vmatprep.mubr.msk.bf16.mxu0 %vm2045_vm2, %v2044_v42 }
  0x79   : > { %1690 = vmatprep.subr.bf16.mxu0 %v2044_v42 }
  0x7c   : > { %1691 = vmatpush3.bf16.msra.mxu0 %v1857_v43 }
  0x7d   : > { %1692 = vmatprep.subr.bf16.mxu0 %v2044_v42 }
  0x80   : > { %1693 = vmatpush3.bf16.msra.mxu0 %v1859_v45 }
  0x81   : > { %1694 = vmatprep.subr.bf16.mxu0 %v2044_v42 }
  0x84   : > { %1695 = vmatpush3.bf16.msra.mxu0 %v1861_v47 }
  0x85   : > { %1696 = vmatprep.subr.bf16.mxu0 %v2044_v42 }
  0x88   : > { %1697 = vmatpush3.bf16.msra.mxu0 %v1863_v49 }
  0x89   : > { %1698 = vmatprep.subr.bf16.mxu0 %v2044_v42 }
  0x8c   : > { %1699 = vmatpush3.bf16.msra.mxu0 %v1865_v51  ;;  %v1872_v51 = vld [vmem:[#allocation5 + $0xb8] sm:$0xff]  }
  0x8d   : > { %1700 = vmatprep.subr.bf16.mxu0 %v2044_v42 }
  0x90   : > { %1701 = vmatpush3.bf16.msra.mxu0 %v1867_v53 }
  0x91   : > { %1702 = vmatprep.subr.bf16.mxu0 %v2044_v42 }
  0x94   : > { %1703 = vmatpush3.bf16.msra.mxu0 %v1869_v55  ;;  %v1883_v55 = vld [vmem:[%s2357_s5 + $0x20] sm:$0xff]  }
  0x95   : > { %1728 = vmatprep.subr.bf16.mxu0 %v2044_v42 }
 0x117   : > { %v1626_v58 = vpop.f32.mrf.mxu0 }
 0x118   : > { %v1646_v59 = vpop.f32.mrf.mxu1 }
 0x119   : > { %v529_v60 = vpop.f32.mrf.mxu0  ;;  %v634_v1 = vadd.f32 %v1646_v59, %v1626_v58  ;;  %v1875_v58 = vld [vmem:[#allocation5 + $0xa0] sm:$0xff]   ;;  %v1885_v59 = vld [vmem:[%s2357_s5 + $0x10] sm:$0xff]  }
 0x11a   : > { %v625_v61 = vpop.f32.mrf.mxu1 }
 0x11b   : > { %v1627_v62 = vpop.f32.mrf.mxu0  ;;  %v626_v4 = vadd.f32 %v625_v61, %v529_v60  ;;  %v1876_v60 = vld [vmem:[#allocation5 + $0x98] sm:$0xff]   ;;  %v1886_v61 = vld [vmem:[%s2357_s5 + $0x8] sm:$0xff]  }
 0x11c   : > { %v1647_v63 = vpop.f32.mrf.mxu1  ;;  %v1878_v62 = vld [vmem:[#allocation5 + $0x90] sm:$0xff]  }
 0x11d   : > { %v532_v0 = vpop.f32.mrf.mxu0  ;;  %v1887_v63 = vld [vmem:[%s2357_s5] sm:$0xff]  }
 0x11e   : > { %v628_v6 = vpop.f32.mrf.mxu1 }
 0x11f   : > { %v629_v11 = vadd.f32 %v628_v6, %v532_v0  ;;  %v1880_v0 = vld [vmem:[#allocation5 + $0x88] sm:$0xff]  }
 0x137   : > { %v1666_v2 = vpop.f32.mrf.mxu0 }
 0x138   : > { %v762_v5 = vadd.f32 %v1666_v2, %v634_v1  ;;  %v1882_v1 = vld [vmem:[#allocation5 + $0x80] sm:$0xff]  }
 0x139   : > { %v746_v7 = vpop.f32.mrf.mxu0 }
 0x13a   : > { %v772_v8 = vadd.f32 %v1495_v3, %v762_v5  ;;  %v760_v9 = vadd.f32 %v746_v7, %v626_v4 }
 0x13b   : > { %v1667_v10 = vpop.f32.mrf.mxu0 }
 0x13c   : > { %v778_v12 = vmul.f32 0.70710677, %v772_v8  ;;  %v770_v13 = vadd.f32 %v1495_v3, %v760_v9  ;;  %v775_v24 = vmul.f32 0.5, %v772_v8 }
 0x13d   : > { %v749_v14 = vpop.f32.mrf.mxu0 }
 0x13e   : > { %1888 = verf.f32 %v778_v12  ;;  %v776_v16 = vmul.f32 0.70710677, %v770_v13  ;;  %v761_v17 = vadd.f32 %v749_v14, %v629_v11  ;;  %v773_v30 = vmul.f32 0.5, %v770_v13 }
 0x140   : > { %1890 = verf.f32 %v776_v16  ;;  %v771_v18 = vadd.f32 %v1495_v3, %v761_v17 }
 0x142   : > { %v777_v20 = vmul.f32 0.70710677, %v771_v18  ;;  %v774_v35 = vmul.f32 0.5, %v771_v18 }
 0x144   : > { %1892 = verf.f32 %v777_v20 }
 0x14b   : > { %v1889_v23 = vpop.eup %1888 }
 0x14c   : > { %v784_v25 = vadd.f32 1.0, %v1889_v23 }
 0x14d   : > { %v1891_v26 = vpop.eup %1890 }
 0x14e   : > { %v787_v27 = vmul.f32 %v784_v25, %v775_v24  ;;  %v782_v28 = vadd.f32 1.0, %v1891_v26 }
 0x150   : > { %v815_v32 = vsel %vm803_vm3, %v787_v27, 0.0  ;;  %v785_v33 = vmul.f32 %v782_v28, %v773_v30 }
 0x151   : > { %v1893_v31 = vpop.eup %1892  ;;  %v2235_v37 = vpack.c.bf16 %v815_v32, %v815_v32 }
 0x152   : > { %v783_v36 = vadd.f32 1.0, %v1893_v31  ;;  %v813_v39 = vsel %vm798_vm4, %v785_v33, 0.0 }
 0x153   : > { %v859_v45 = vshll.u32 %v2235_v37, 16  ;;  %v1062_v3 = vrot.slane %v2235_v37, 1 }
 0x154   : > { %v786_v38 = vmul.f32 %v783_v36, %v774_v35  ;;  %v1532_v36 = vld [vmem:[%s2358_s6] ss:$0 sm:$0xff] }
 0x155   : > { %v861_v50 = vrot.slane %v859_v45, 1  ;;  %v1292_v45 = vand.u32 127, %v790_v15 }
 0x156   : > { %v1513_v41 = vpack.c.bf16 %v786_v38, %v785_v33  ;;  %v816_v43 = vpack.c.bf16 %v786_v38, %v813_v39 }
 0x157   : > { %vm1293_vm7 = vcmp.lt.s32.totalorder %v1292_v45, 8 }
 0x158   : > { %1705 = vmatmul.mubr.msk.bf16.vlgmr.msra.gmra.mxu0 %vm1512_vm6, %v1513_v41  ;;  %v854_v44 = vshll.u32 %v816_v43, 16  ;;  %v852_v47 = vshrl.u32 %v816_v43, 16  ;;  %v1061_v2 = vrot.slane %v816_v43, 1 }
 0x159   : > { %1729 = vmatpush3.bf16.msra.mxu0 %v1877_v40  ;;  %1744 = vmatprep.mubr.msk.bf16.mxu0 %vm2045_vm2, %v2044_v42 }
 0x15a   : > { %v856_v48 = vrot.slane %v854_v44, 1  ;;  %1730 = vmatprep.subr.bf16.mxu0 %v2044_v42  ;;  %v1063_v4 = vsel %vm658_vm1, %v1061_v2, %v1062_v3 }
 0x15c   : > { %v857_v49 = vor.u32 %v856_v48, %v852_v47  ;;  %v1533_v48 = vsel %vm1293_vm7, 1.0, %v2044_v42 }
 0x15d   : > { %1731 = vmatpush3.bf16.msra.mxu0 %v1879_v46 }
 0x15e   : > { %v862_v53 = vsel %vm429_vm0, %v857_v49, %v861_v50  ;;  %1732 = vmatprep.subr.bf16.mxu0 %v2044_v42 }
 0x15f   : > { %1685 = vmatmul.mubr.bf16.vlgmr.msra.gmra.mxu1 %v862_v53 }
 0x160   : > { %1709 = vmatpush3.bf16.msra.mxu1 %v1872_v51  ;;  %1724 = vmatprep.mubr.msk.bf16.mxu1 %vm2045_vm2, %v2044_v42 }
 0x161   : > { %1710 = vmatprep.subr.bf16.mxu1 %v2044_v42  ;;  %1733 = vmatpush3.bf16.msra.mxu0 %v1881_v52 }
 0x162   : > { %1734 = vmatprep.subr.bf16.mxu0 %v2044_v42 }
 0x164   : > { %1711 = vmatpush3.bf16.msra.mxu1 %v1873_v54 }
 0x165   : > { %1712 = vmatprep.subr.bf16.mxu1 %v2044_v42  ;;  %1735 = vmatpush3.bf16.msra.mxu0 %v1883_v55 }
 0x166   : > { %1736 = vmatprep.subr.bf16.mxu0 %v2044_v42 }
 0x168   : > { %1713 = vmatpush3.bf16.msra.mxu1 %v1874_v56 }
 0x169   : > { %1714 = vmatprep.subr.bf16.mxu1 %v2044_v42  ;;  %1737 = vmatpush3.bf16.msra.mxu0 %v1884_v57 }
 0x16a   : > { %1738 = vmatprep.subr.bf16.mxu0 %v2044_v42 }
 0x16c   : > { %1715 = vmatpush3.bf16.msra.mxu1 %v1875_v58 }
 0x16d   : > { %1716 = vmatprep.subr.bf16.mxu1 %v2044_v42  ;;  %1739 = vmatpush3.bf16.msra.mxu0 %v1885_v59 }
 0x16e   : > { %1740 = vmatprep.subr.bf16.mxu0 %v2044_v42 }
 0x170   : > { %1717 = vmatpush3.bf16.msra.mxu1 %v1876_v60 }
 0x171   : > { %1718 = vmatprep.subr.bf16.mxu1 %v2044_v42  ;;  %1741 = vmatpush3.bf16.msra.mxu0 %v1886_v61 }
 0x172   : > { %1742 = vmatprep.subr.bf16.mxu0 %v2044_v42 }
 0x174   : > { %1719 = vmatpush3.bf16.msra.mxu1 %v1878_v62  ;;  %v1534_v62 = vld [vmem:[%s2359_s7] ss:$0 sm:$0xff] }
 0x175   : > { %1720 = vmatprep.subr.bf16.mxu1 %v2044_v42  ;;  %1743 = vmatpush3.bf16.msra.mxu0 %v1887_v63 }
 0x178   : > { %1721 = vmatpush3.bf16.msra.mxu1 %v1880_v0  ;;  %1745 = vmatmul.mubr.bf16.vlgmr.msra.gmra.mxu0 %v2206_v34  ;;  %v1535_v0 = vld [vmem:[%s2360_s8] ss:$0 sm:$0xff] }
 0x179   : > { %1722 = vmatprep.subr.bf16.mxu1 %v2044_v42 }
 0x17c   : > { %1723 = vmatpush3.bf16.msra.mxu1 %v1882_v1 }
 0x17f   : > { %1725 = vmatmul.mubr.bf16.vlgmr.msra.gmra.mxu1 %v1063_v4 }
 0x218   : > { %v1035_v5 = vpop.f32.mrf.mxu0 }
 0x21a   : > { %v1706_v6 = vpop.f32.mrf.mxu0 }
 0x21c   : > { %v1038_v7 = vpop.f32.mrf.mxu0 }
 0x21e   : > { %v1707_v8 = vpop.f32.mrf.mxu0 }
 0x21f   : > { %v946_v9 = vpop.f32.mrf.mxu1 }
 0x220   : > { %v1036_v16 = vadd.f32 %v1035_v5, %v946_v9 }
 0x221   : > { %v1686_v10 = vpop.f32.mrf.mxu1 }
 0x223   : > { %v949_v11 = vpop.f32.mrf.mxu1 }
 0x224   : > { %v1039_v22 = vadd.f32 %v1038_v7, %v949_v11 }
 0x225   : > { %v1687_v12 = vpop.f32.mrf.mxu1 }
 0x238   : > { %v1273_v13 = vpop.f32.mrf.mxu0 }
 0x23a   : > { %v1746_v14 = vpop.f32.mrf.mxu0 }
 0x23c   : > { %v1276_v34 = vpop.f32.mrf.mxu0 }
 0x23e   : > { %v1747_v17 = vpop.f32.mrf.mxu0 }
 0x23f   : > { %v1147_v18 = vpop.f32.mrf.mxu1 }
 0x240   : > { %v1154_v20 = vadd.f32 %v1147_v18, %v1036_v16 }
 0x241   : > { %v1726_v21 = vpop.f32.mrf.mxu1 }
 0x242   : > { %v1163_v23 = vadd.f32 %v1523_v19, %v1154_v20 }
 0x243   : > { %v1150_v24 = vpop.f32.mrf.mxu1 }
 0x244   : > { %v1167_v25 = vmul.f32 0.70710677, %v1163_v23  ;;  %v1155_v26 = vadd.f32 %v1150_v24, %v1039_v22  ;;  %v1165_v31 = vmul.f32 0.5, %v1163_v23 }
 0x245   : > { %v1727_v27 = vpop.f32.mrf.mxu1 }
 0x246   : > { %1894 = verf.f32 %v1167_v25  ;;  %v1164_v28 = vadd.f32 %v1523_v19, %v1155_v26 }
 0x248   : > { %v1168_v29 = vmul.f32 0.70710677, %v1164_v28  ;;  %v1166_v38 = vmul.f32 0.5, %v1164_v28 }
 0x24a   : > { %1896 = verf.f32 %v1168_v29 }
 0x253   : > { %v1895_v30 = vpop.eup %1894 }
 0x254   : > { %v1171_v32 = vadd.f32 1.0, %v1895_v30 }
 0x256   : > { %v1173_v33 = vmul.f32 %v1171_v32, %v1165_v31 }
 0x257   : > { %v1897_v35 = vpop.eup %1896 }
 0x258   : > { %v1280_v37 = vadd.f32 %v1273_v13, %v1173_v33  ;;  %v1172_v39 = vadd.f32 1.0, %v1897_v35 }
 0x25a   : > { %v1174_v40 = vmul.f32 %v1172_v39, %v1166_v38  ;;  %v1289_v41 = vadd.f32 %v1532_v36, %v1280_v37 }
 0x25c   : > { %v1281_v43 = vadd.f32 %v1276_v34, %v1174_v40  ;;  %1296 = vadd.xlane.f32.xlu0 %v1289_v41 }
 0x25e   : > { %v1290_v44 = vadd.f32 %v1532_v36, %v1281_v43 }
 0x260   : > { %1298 = vadd.xlane.f32.xlu0 %v1290_v44 }
 0x2e5   : > { %v1297_v46 = vpop.xlane.xlu0 %1296 }
 0x2e6   : > { %v1300_v47 = vmul.f32 0.125, %v1297_v46 }
 0x2e8   : > { %v1302_v49 = vsub.f32 %v1289_v41, %v1300_v47 }
 0x2e9   : > { %v1299_v50 = vpop.xlane.xlu0 %1298 }
 0x2ea   : > { %v1301_v51 = vmul.f32 0.125, %v1299_v50  ;;  %v1304_v52 = vmul.f32 %v1533_v48, %v1302_v49 }
 0x2ec   : > { %v1303_v53 = vsub.f32 %v1290_v44, %v1301_v51  ;;  %v1306_v54 = vmul.f32 %v1304_v52, %v1304_v52 }
 0x2ee   : > { %1308 = vadd.xlane.f32.xlu1 %v1306_v54  ;;  %v1305_v55 = vmul.f32 %v1533_v48, %v1303_v53 }
 0x2f0   : > { %v1307_v56 = vmul.f32 %v1305_v55, %v1305_v55 }
 0x2f2   : > { %1310 = vadd.xlane.f32.xlu1 %v1307_v56 }
 0x377   : > { %v1309_v57 = vpop.xlane.xlu1 %1308 }
 0x378   : > { %v1312_v58 = vmul.f32 0.125, %v1309_v57 }
 0x37a   : > { %v1314_v59 = vadd.f32 1e-05, %v1312_v58 }
 0x37b   : > { %v1311_v15 = vpop.xlane.xlu1 %1310 }
 0x37c   : > { %1898 = vrsqrt.f32 %v1314_v59  ;;  %v1313_v60 = vmul.f32 0.125, %v1311_v15 }
 0x37e   : > { %v1315_v61 = vadd.f32 1e-05, %v1313_v60 }
 0x380   : > { %1900 = vrsqrt.f32 %v1315_v61 }
 0x389   : > { %v1899_v42 = vpop.eup %1898 }
 0x38a   : > { %v1318_v63 = vmul.f32 %v1899_v42, %v1304_v52 }
 0x38c   : > { %v1327_v1 = vmul.f32 %v1534_v62, %v1318_v63 }
 0x38d   : > { %v1901_v2 = vpop.eup %1900 }
 0x38e   : > { %v1336_v3 = vadd.f32 %v1535_v0, %v1327_v1  ;;  %v1319_v4 = vmul.f32 %v1901_v2, %v1305_v55 }
 0x390   : > { %v1328_v5 = vmul.f32 %v1534_v62, %v1319_v4  ;;  %1338 = vst [vmem:[%s379_s28] sm:$0xff] %v1336_v3 }
 0x392   : > { %v1337_v6 = vadd.f32 %v1535_v0, %v1328_v5 }
 0x394   : > { %1339 = vst [vmem:[%s379_s28 + $0x8] sm:$0xff] %v1337_v6 }
 0x395   : > { %1967 = shalt.err (!%p1964_p9)
}
 0x396   : > { %s1968_s26 = scalar_lea.hbm %s2303_s24, 256  ;;  %s1972_s28 = scalar_lea.hbm %s2361_s9, 512 }
 0x397   : > { %p1969_p12 = scmp.ne.s32.totalorder %s2303_s24, %s1968_s26  ;;  %p1973_p5 = scmp.lt.s32.totalorder %s2303_s24, %s2361_s9 }
 0x398   : > { %p1974_p3 = scmp.lt.s32.totalorder %s1972_s28, %s1968_s26 }
 0x399   : > { %p1970_p1 = pnand %p1969_p12, %p2370_p10 }
 0x39a   : > { %p1975_p4 = por %p1974_p3, %p1973_p5 }
 0x39b   : > { %p1971_p2 = pneg %p1970_p1 }
 0x39d   : > { %p1976_p8 = pnand %p1975_p4, %p1971_p2 }
 0x39f   : > { %1979 = shalt.err (!%p1976_p8)
}
 0x3a0   : > { %s2048_s29 = smov 128   ;;  %s2049_s12 = smov 8  }
 0x3a1   : > { %1757 = dma.vmem_to_hbm [thread:$0]  (%p2370_p10), %s2305_s15, 256, %s2303_s24, %s2307_s27, %s2048_s29, %s2048_s29, %s2049_s12  }
 0x3a2 PF: > { %p1774_p11 = scmp.ge.s32.totalorder %s2038_s14, 2  ;;  %s1371_s16 = sand.u32 1, %s2018_s30  }
 0x3a3   : > { %p2371_p13 = scmp.ne.s32.totalorder %s2366_s21, 0  ;;  %s1372_s18 = scalar_lea.sflag [#allocation4], %s1371_s16 }
 0x3a5   : > { %p1767_p0 = pnand %p1774_p11, %p2371_p13 }
 0x3a7   : > { %p1768_p6 = pneg %p1767_p0 }
 0x3a9   : > { %2013 = dma.done.wait (%p1768_p6), %s1372_s18, 256  }
 0x3aa   : > { %2015 = vsyncadd (%p1768_p6), %s1372_s18, 4294967040  ;;  %s24_s14 = sadd.s32 1, %s2038_s14   ;;  %s2372_s19 = sld [smem:[#allocation11_spill]] }
 0x3ab   : > { %p21_p7 = scmp.ge.s32.totalorder %s24_s14, 4   ;;  %s2373_s30 = smov %s2022_s10 }
 0x3ac   : > { %s2374_s10 = smov %s2026_s11  ;;  %s2375_s11 = smov %s2153_s22 }
 0x3ad   : > { %s2376_s12 = smov %s2034_s13  ;;  %23 = sbr.rel (!%p21_p7) target bundleno = 6 (0x6), region = 104 }
 0x3b0   : > { %s2377_s13 = smov %s2372_s19 }
 0x3b2   :  { %1377 = vsyncpa [#allocation3], 1 }
 0x3b3   :  { %1379 = vsyncpa [#allocation3 + $0x1], 1 }
 0x3b4   :  { %1380 = vsyncpa [#allocation6], 1 }
 0x3b5   :  { %1381 = vsyncpa [#allocation4], 1 }
 0x3b6   :  { %1383 = vsyncpa [#allocation4 + $0x1], 1 }

// kernel: tpu_custom_call.1
= control target key start
LH: loop header
LB: loop body
LE: loop exit
PB: predicated region body
PF: predicated region fallthrough
CT: control target
= control target key end

     0   :  { %14 = vsyncpa [#allocation3], 0  ;;  %s2352_s0 = inlined_call_operand.vmem [shape: f32[2,1,20,128], index: 0, kind: input, shape index: {}]   ;;  %s2353_s1 = inlined_call_operand.hbm [shape: bf16[3,128,128], index: 1, kind: input, shape index: {}]   ;;  %s2354_s2 = inlined_call_operand.vmem [shape: f32[1,128], index: 2, kind: input, shape index: {}]   ;;  %s2355_s3 = inlined_call_operand.hbm [shape: bf16[3,128,128], index: 3, kind: input, shape index: {}]   ;;  %s2356_s4 = inlined_call_operand.vmem [shape: f32[1,128], index: 4, kind: input, shape index: {}]   ;;  %s2357_s5 = inlined_call_operand.vmem [shape: bf16[128,128], index: 5, kind: input, shape index: {}]   ;;  %s2358_s6 = inlined_call_operand.vmem [shape: f32[1,128], index: 6, kind: input, shape index: {}]   ;;  %s2359_s7 = inlined_call_operand.vmem [shape: f32[1,128], index: 7, kind: input, shape index: {}]   ;;  %s2360_s8 = inlined_call_operand.vmem [shape: f32[1,128], index: 8, kind: input, shape index: {}]   ;;  %s2361_s9 = inlined_call_operand.hbm [shape: f32[2,16,128], index: 9, kind: output, shape index: {}]  }
   0x1   :  { %15 = vsyncpa [#allocation6], 0 }
   0x2   :  { %16 = vsyncpa [#allocation4], 0 }
   0x3   :  { %18 = vsyncpa [#allocation4 + $0x1], 0  ;;  %s2100_s30 = smov 0   ;;  %s2102_s10 = smov 0  }
   0x4   :  { %s2104_s11 = smov 0   ;;  %s2106_s12 = smov 0  }
   0x5   :  { %s2108_s13 = smov 0   ;;  %s2110_s14 = smov 0  }
   0x6 LB: > { %s1460_s15 = sadd.s32 4294967295, %s2038_s14   ;;  %s1461_s16 = sadd.s32 4294967294, %s2038_s14   ;;  %s2038_s14 = sphi %s2110_s14, %s24_s14   ;;  %s2034_s13 = sphi %s2108_s13, %s2377_s13   ;;  %s2030_s12 = sphi %s2106_s12, %s2376_s12   ;;  %s2026_s11 = sphi %s2104_s11, %s2375_s11   ;;  %s2022_s10 = sphi %s2102_s10, %s2374_s10   ;;  %s2018_s30 = sphi %s2100_s30, %s2373_s30  }
   0x7   : > { %s36_s17 = sadd.s32 1, %s2034_s13  ;;  %s241_s18 = sadd.s32 1, %s2026_s11 }
   0x8   : > { %p38_p0 = scmp.ge.s32.totalorder %s36_s17, 2  ;;  %p251_p1 = scmp.ne.s32.totalorder %s2026_s11, %s2022_s10 }
   0x9   : > { %p252_p2 = scmp.eq.s32.totalorder %s1460_s15, 1  ;;  %p257_p3 = scmp.ne.s32.totalorder %s2022_s10, %s2018_s30 }
   0xa   : > { %s2379_s17 = smov (%p38_p0, %s36_s17), 0  ;;  %p258_p5 = scmp.eq.s32.totalorder %s1461_s16, 1 }
   0xb   : > { %2364 = sst [smem:[#allocation11_spill]] %s2379_s17  ;;  %p2140_p4 = por %p252_p2, %p251_p1 }
   0xc   : > { %s236_s20 = ssub.s32 %s2034_s13, %s2379_s17  ;;  %p1462_p6 = scmp.ge.s32.totalorder %s2038_s14, 1 }
   0xd   : > { %s2365_s19 = scalar_select %p2140_p4, 1, 0 }
   0xe   : > { %p239_p7 = scmp.eq.s32.totalorder %s236_s20, 0  ;;  %p2147_p8 = por %p258_p5, %p257_p3 }
   0xf   : > { %p265_p9 = scmp.lt.s32.totalorder %s2038_s14, 3  ;;  %p2159_p11 = scmp.eq.s32.totalorder %s1460_s15, 0 }
  0x10   : > { %s2366_s21 = scalar_select %p2147_p8, 1, 0 }
  0x11   : > { %s2153_s22 = scalar_select %p239_p7, %s2026_s11, %s241_s18  }
  0x12   : > { %p2155_p10 = pnand %p1462_p6, %p265_p9  ;;  %s2040_s25 = smov [#allocation2]  }
  0x13   : > { %s277_s26 = sshll.u32 %s2040_s25, 4  ;;  %s2041_s28 = smov [#allocation5]   ;;  %s278_s26 = int_to_ptr.vmem [resolvable:$true] %s277_s26 }
  0x14   : > { %p1759_p12 = pneg %p2155_p10  ;;  %s293_s29 = sshll.u32 %s2041_s28, 4  ;;  %s294_s29 = int_to_ptr.vmem [resolvable:$true] %s293_s29 }
  0x15   : > { %s1913_s15 = scalar_lea.vmem %s278_s26, 3072  ;;  %p1921_p5 = scmp.lt.s32.totalorder %s278_s26, %s278_s26 }
  0x16   : > { %p2167_p13 = pnand %p2159_p11, %p1759_p12  ;;  %p1914_p1 = scmp.ne.s32.totalorder %s278_s26, %s1913_s15 }
  0x17   : > { %p1922_p6 = scmp.lt.s32.totalorder %s1913_s15, %s1913_s15 }
  0x18   : > { %p1904_p0 = pneg %p2167_p13 }
  0x19   : > { %p1923_p7 = por %p1922_p6, %p1921_p5 }
  0x1a   : > { %p1916_p2 = pnand %p1914_p1, %p1904_p0 }
  0x1c   : > { %p1917_p3 = pneg %p1916_p2 }
  0x1e   : > { %p1924_p9 = pnand %p1923_p7, %p1917_p3 }
  0x20   : > { %1927 = shalt.err (!%p1924_p9)
}
  0x21   : > { %s2042_s16 = smov 64   ;;  %s2043_s18 = smov 4  }
  0x22   : > { %1762 = dma.hbm_to_vmem [thread:$0]  (!%p2167_p13), %s2353_s1, 3072, %s278_s26, [#allocation3], %s2042_s16, %s2042_s16, %s2043_s18  }
  0x23   : > { %s1939_s28 = scalar_lea.vmem %s294_s29, 3072  ;;  %p1947_p8 = scmp.lt.s32.totalorder %s294_s29, %s294_s29 }
  0x24   : > { %p1940_p12 = scmp.ne.s32.totalorder %s294_s29, %s1939_s28  ;;  %p1948_p4 = scmp.lt.s32.totalorder %s1939_s28, %s1939_s28 }
  0x26   : > { %p1942_p1 = pnand %p1940_p12, %p1904_p0  ;;  %p1949_p5 = por %p1948_p4, %p1947_p8 }
  0x28   : > { %p1943_p2 = pneg %p1942_p1 }
  0x2a   : > { %p1950_p3 = pnand %p1949_p5, %p1943_p2 }
  0x2c   : > { %1953 = shalt.err (!%p1950_p3)
}
  0x2d   : > { %1765 = dma.hbm_to_vmem [thread:$0]  (!%p2167_p13), %s2355_s3, 3072, %s294_s29, [#allocation6], %s2042_s16, %s2042_s16, %s2043_s18  }
  0x2e   : > { %336 = sbr.rel (%p2155_p10) target bundleno = 930 (0x3a2), region = 56 }
  0x33   : > { %2005 = dma.done.wait (%p2159_p11), [#allocation3], 3072  }
  0x34   : > { %2007 = vsyncadd (%p2159_p11), [#allocation3], 4294964224 }
  0x35   : > { %2009 = dma.done.wait (%p2159_p11), [#allocation6], 3072  }
  0x36   : > { %2011 = vsyncadd (%p2159_p11), [#allocation6], 4294964224  ;;  %v1832_v0 = vld [vmem:[#allocation2 + $0x78] sm:$0xff]   ;;  %p380_p4 = scmp.lt.s32.totalorder %s2030_s12, 1  ;;  %v1834_v2 = vld [vmem:[#allocation2 + $0x70] sm:$0xff]   ;;  %vm658_vm1 = vcmask 1046528  }
  0x37   : > { %v1833_v1 = vld [vmem:[#allocation2 + $0x38] sm:$0xff]   ;;  %1608 = vmatprep.subr.bf16.mxu0 %v1832_v0  ;;  %v1835_v3 = vld [vmem:[#allocation2 + $0x30] sm:$0xff]   ;;  %v1836_v4 = vld [vmem:[#allocation2 + $0x68] sm:$0xff]   ;;  %vm429_vm0 = vsmask.f32 7424  ;;  %v2044_v42 = vmov 0.0  }
  0x38   : > { %1628 = vmatprep.subr.bf16.mxu1 %v1833_v1  ;;  %1609 = vmatpush3.bf16.msra.mxu0 %v1832_v0  ;;  %v1837_v5 = vld [vmem:[#allocation2 + $0x28] sm:$0xff]   ;;  %s381_s17 = scalar_select %p380_p4, %s2030_s12, 1  ;;  %v1838_v6 = vld [vmem:[#allocation2 + $0x60] sm:$0xff]   ;;  %v1840_v8 = vld [vmem:[#allocation2 + $0x58] sm:$0xff]   ;;  %vm2045_vm2 = vmmov 0   ;;  %vm2046_vm5 = vmmov 1  }
  0x39   : > { %1629 = vmatpush3.bf16.msra.mxu1 %v1833_v1  ;;  %1610 = vmatprep.subr.bf16.mxu0 %v1834_v2  ;;  %v1839_v7 = vld [vmem:[#allocation2 + $0x20] sm:$0xff]   ;;  %v1841_v9 = vld [vmem:[#allocation2 + $0x18] sm:$0xff]   ;;  %v1842_v10 = vld [vmem:[#allocation2 + $0x50] sm:$0xff]   ;;  %s377_s26 = sand.u32 1, %s2022_s10   ;;  %s1541_s25 = sshll.u32 %s2030_s12, 8 }
  0x3a   : > { %1630 = vmatprep.subr.bf16.mxu1 %v1835_v3  ;;  %s1748_s23 = smul.u32 24, %s381_s17  ;;  %v1843_v14 = vld [vmem:[#allocation2 + $0x10] sm:$0xff]   ;;  %v1844_v20 = vld [vmem:[#allocation2 + $0x48] sm:$0xff]   ;;  %v1846_v24 = vld [vmem:[#allocation2 + $0x40] sm:$0xff]   ;;  %s1469_s16 = sshll.u32 %s377_s26, 4 }
  0x3b   : > { %v1845_v21 = vld [vmem:[#allocation2 + $0x8] sm:$0xff]   ;;  %v1847_v26 = vld [vmem:[#allocation2] sm:$0xff]   ;;  %v1848_v31 = vld [vmem:[#allocation2 + $0xb8] sm:$0xff]   ;;  %s379_s28 = scalar_lea.vmem [#allocation7], %s1469_s16  ;;  %s2303_s24 = scalar_lea.hbm %s2361_s9, %s1541_s25 }
  0x3c   : > { %1611 = vmatpush3.bf16.msra.mxu0 %v1834_v2  ;;  %s388_s27 = scalar_lea.vmem %s2352_s0, %s1748_s23  ;;  %v1849_v33 = vld [vmem:[#allocation2 + $0xb0] sm:$0xff]   ;;  %v1850_v35 = vld [vmem:[#allocation2 + $0xa8] sm:$0xff]   ;;  %v1851_v36 = vld [vmem:[#allocation2 + $0xa0] sm:$0xff]   ;;  %s1356_s15 = sshll.u32 %s379_s28, 4  ;;  %s2305_s15 = int_to_ptr.vmem [resolvable:$true] %s1356_s15 }
  0x3d   : > { %1631 = vmatpush3.bf16.msra.mxu1 %v1835_v3  ;;  %1612 = vmatprep.subr.bf16.mxu0 %v1836_v4  ;;  %v391_v11 = vld [vmem:[%s388_s27] sm:$0xff]  ;;  %v392_v12 = vld [vmem:[%s388_s27 + $0x8] sm:$0xff]  ;;  %v393_v13 = vld [vmem:[%s388_s27 + $0x10] sm:$0xf]  ;;  %s2307_s27 = scalar_lea.sflag [#allocation4], %s377_s26  ;;  %s1954_s29 = scalar_lea.vmem %s2305_s15, 256 }
  0x3e   : > { %1632 = vmatprep.subr.bf16.mxu1 %v1837_v5  ;;  %v394_v15 = vpack.c.bf16 %v392_v12, %v391_v11  ;;  %v395_v16 = vpack.c.bf16 %v393_v13, %v393_v13  ;;  %v1852_v37 = vld [vmem:[#allocation2 + $0x98] sm:$0xff]   ;;  %v1853_v38 = vld [vmem:[#allocation2 + $0x90] sm:$0xff]   ;;  %v1854_v39 = vld [vmem:[#allocation2 + $0x88] sm:$0xff]   ;;  %p1955_p8 = scmp.ne.s32.totalorder %s2305_s15, %s1954_s29  ;;  %p2370_p10 = scmp.ne.s32.totalorder %s2365_s19, 0 }
  0x3f   : > { %v1855_v40 = vld [vmem:[#allocation2 + $0x80] sm:$0xff]   ;;  %v1856_v41 = vld [vmem:[#allocation5 + $0x38] sm:$0xff]   ;;  %v1857_v43 = vld [vmem:[#allocation5 + $0x30] sm:$0xff]   ;;  %s2047_s12 = smov [#allocation7]  }
  0x40   : > { %1613 = vmatpush3.bf16.msra.mxu0 %v1836_v4  ;;  %v431_v17 = vshrl.u32 %v394_v15, 16  ;;  %v433_v18 = vshll.u32 %v394_v15, 16  ;;  %v438_v19 = vshll.u32 %v395_v16, 16  ;;  %1644 = vmatprep.mubr.bf16.mxu1 %v394_v15  ;;  %v442_v27 = vshrl.u32 %v395_v16, 16  ;;  %v1858_v44 = vld [vmem:[#allocation5 + $0x78] sm:$0xff]   ;;  %v1859_v45 = vld [vmem:[#allocation5 + $0x28] sm:$0xff]   ;;  %p1956_p11 = pnand %p1955_p8, %p2370_p10 }
  0x41   : > { %1633 = vmatpush3.bf16.msra.mxu1 %v1837_v5  ;;  %1614 = vmatprep.subr.bf16.mxu0 %v1838_v6  ;;  %v659_v29 = vrot.slane %v394_v15, 1  ;;  %v660_v30 = vrot.slane %v395_v16, 1  ;;  %v1860_v46 = vld [vmem:[#allocation5 + $0x70] sm:$0xff]   ;;  %v1861_v47 = vld [vmem:[#allocation5 + $0x20] sm:$0xff]   ;;  %v1862_v48 = vld [vmem:[#allocation5 + $0x68] sm:$0xff]   ;;  %v790_v15 = vlaneseq  ;;  %s1958_s16 = sshll.u32 %s2047_s12, 4  ;;  %s1959_s16 = int_to_ptr.vmem [resolvable:$false] %s1958_s16 }
  0x42   : > { %1634 = vmatprep.subr.bf16.mxu1 %v1839_v7  ;;  %v435_v22 = vrot.slane %v433_v18, 1  ;;  %v440_v23 = vrot.slane %v438_v19, 1  ;;  %v1863_v49 = vld [vmem:[#allocation5 + $0x18] sm:$0xff]   ;;  %v1864_v50 = vld [vmem:[#allocation5 + $0x60] sm:$0xff]   ;;  %v1865_v51 = vld [vmem:[#allocation5 + $0x10] sm:$0xff]   ;;  %p1957_p13 = pneg %p1956_p11  ;;  %s1960_s18 = scalar_lea.vmem %s1959_s16, 512 }
  0x43   : > { %v2206_v34 = vsel %vm658_vm1, %v659_v29, %v660_v30  ;;  %v1866_v52 = vld [vmem:[#allocation5 + $0x58] sm:$0xff]   ;;  %v1867_v53 = vld [vmem:[#allocation5 + $0x8] sm:$0xff]   ;;  %v1868_v54 = vld [vmem:[#allocation5 + $0x50] sm:$0xff]   ;;  %v791_v19 = vshrl.u32 %v790_v15, 7  ;;  %p1961_p0 = scmp.lt.s32.totalorder %s2305_s15, %s1959_s16  ;;  %p1962_p6 = scmp.lt.s32.totalorder %s1960_s18, %s1954_s29 }
  0x44   : > { %1615 = vmatpush3.bf16.msra.mxu0 %v1838_v6  ;;  %v436_v25 = vor.u32 %v435_v22, %v431_v17  ;;  %v444_v32 = vor.u32 %v442_v27, %v440_v23  ;;  %v1869_v55 = vld [vmem:[#allocation5] sm:$0xff]   ;;  %v1870_v56 = vld [vmem:[#allocation5 + $0x48] sm:$0xff]  }
  0x45   : > { %1635 = vmatpush3.bf16.msra.mxu1 %v1839_v7  ;;  %1616 = vmatprep.subr.bf16.mxu0 %v1840_v8  ;;  %v1871_v57 = vld [vmem:[#allocation5 + $0x40] sm:$0xff]   ;;  %v795_v29 = vadd.s32 4294967295, %v791_v19  ;;  %p1963_p7 = por %p1962_p6, %p1961_p0 }
  0x46   : > { %1636 = vmatprep.subr.bf16.mxu1 %v1841_v9  ;;  %v441_v28 = vsel %vm429_vm0, %v436_v25, %v440_v23  ;;  %v1495_v3 = vld [vmem:[%s2354_s2] ss:$0 sm:$0xff] }
  0x47   : > { %1624 = vmatprep.mubr.bf16.mxu0 %v441_v28  ;;  %vm798_vm4 = vcmp.ge.s32.totalorder %v795_v29, 0  ;;  %p1964_p9 = pnand %p1963_p7, %p1957_p13 }
  0x48   : > { %1617 = vmatpush3.bf16.msra.mxu0 %v1840_v8  ;;  %vm1512_vm6 = vmpackc.low %vm2046_vm5, %vm798_vm4 }
  0x49   : > { %1637 = vmatpush3.bf16.msra.mxu1 %v1841_v9  ;;  %1618 = vmatprep.subr.bf16.mxu0 %v1842_v10 }
  0x4a   : > { %1638 = vmatprep.subr.bf16.mxu1 %v1843_v14 }
  0x4c   : > { %1619 = vmatpush3.bf16.msra.mxu0 %v1842_v10 }
  0x4d   : > { %1639 = vmatpush3.bf16.msra.mxu1 %v1843_v14  ;;  %1620 = vmatprep.subr.bf16.mxu0 %v1844_v20 }
  0x4e   : > { %1640 = vmatprep.subr.bf16.mxu1 %v1845_v21 }
  0x50   : > { %1621 = vmatpush3.bf16.msra.mxu0 %v1844_v20 }
  0x51   : > { %1641 = vmatpush3.bf16.msra.mxu1 %v1845_v21  ;;  %1622 = vmatprep.subr.bf16.mxu0 %v1846_v24  ;;  %v793_v21 = vadd.s32 16, %v791_v19  ;;  %v1523_v19 = vld [vmem:[%s2356_s4] ss:$0 sm:$0xff] }
  0x52   : > { %1642 = vmatprep.subr.bf16.mxu1 %v1847_v26 }
  0x53   : > { %v797_v22 = vadd.s32 4294967295, %v793_v21 }
  0x54   : > { %1623 = vmatpush3.bf16.msra.mxu0 %v1846_v24 }
  0x55   : > { %1643 = vmatpush3.bf16.msra.mxu1 %v1847_v26  ;;  %1648 = vmatprep.subr.bf16.mxu0 %v1848_v31  ;;  %vm803_vm3 = vcmp.lt.s32.totalorder %v797_v22, 16 }
  0x56   : > { %1668 = vmatprep.subr.bf16.mxu1 %v2044_v42 }
  0x57   : > { %1625 = vmatmul.mubr.bf16.vlgmr.msra.gmra.mxu0 %v444_v32 }
  0x58   : > { %1645 = vmatmul.mubr.bf16.vlgmr.msra.gmra.mxu1 %v395_v16  ;;  %1649 = vmatpush3.bf16.msra.mxu0 %v1848_v31 }
  0x59   : > { %1650 = vmatprep.subr.bf16.mxu0 %v1849_v33  ;;  %1664 = vmatprep.mubr.bf16.mxu0 %v2206_v34 }
  0x5a   : > { %1669 = vmatpush3.bf16.msra.mxu1 %v1858_v44  ;;  %1684 = vmatprep.mubr.msk.bf16.mxu1 %vm2045_vm2, %v2044_v42 }
  0x5b   : > { %1670 = vmatprep.subr.bf16.mxu1 %v2044_v42 }
  0x5c   : > { %1651 = vmatpush3.bf16.msra.mxu0 %v1849_v33 }
  0x5d   : > { %1652 = vmatprep.subr.bf16.mxu0 %v1850_v35 }
  0x5e   : > { %1671 = vmatpush3.bf16.msra.mxu1 %v1860_v46  ;;  %v1879_v46 = vld [vmem:[%s2357_s5 + $0x30] sm:$0xff]  }
  0x5f   : > { %1672 = vmatprep.subr.bf16.mxu1 %v2044_v42 }
  0x60   : > { %1653 = vmatpush3.bf16.msra.mxu0 %v1850_v35 }
  0x61   : > { %1654 = vmatprep.subr.bf16.mxu0 %v1851_v36 }
  0x62   : > { %1673 = vmatpush3.bf16.msra.mxu1 %v1862_v48 }
  0x63   : > { %1674 = vmatprep.subr.bf16.mxu1 %v2044_v42 }
  0x64   : > { %1655 = vmatpush3.bf16.msra.mxu0 %v1851_v36 }
  0x65   : > { %1656 = vmatprep.subr.bf16.mxu0 %v1852_v37 }
  0x66   : > { %1675 = vmatpush3.bf16.msra.mxu1 %v1864_v50 }
  0x67   : > { %1676 = vmatprep.subr.bf16.mxu1 %v2044_v42 }
  0x68   : > { %1657 = vmatpush3.bf16.msra.mxu0 %v1852_v37 }
  0x69   : > { %1658 = vmatprep.subr.bf16.mxu0 %v1853_v38 }
  0x6a   : > { %1677 = vmatpush3.bf16.msra.mxu1 %v1866_v52  ;;  %v1881_v52 = vld [vmem:[%s2357_s5 + $0x28] sm:$0xff]  }
  0x6b   : > { %1678 = vmatprep.subr.bf16.mxu1 %v2044_v42 }
  0x6c   : > { %1659 = vmatpush3.bf16.msra.mxu0 %v1853_v38 }
  0x6d   : > { %1660 = vmatprep.subr.bf16.mxu0 %v1854_v39 }
  0x6e   : > { %1679 = vmatpush3.bf16.msra.mxu1 %v1868_v54  ;;  %v1873_v54 = vld [vmem:[#allocation5 + $0xb0] sm:$0xff]  }
  0x6f   : > { %1680 = vmatprep.subr.bf16.mxu1 %v2044_v42 }
  0x70   : > { %1661 = vmatpush3.bf16.msra.mxu0 %v1854_v39 }
  0x71   : > { %1662 = vmatprep.subr.bf16.mxu0 %v1855_v40 }
  0x72   : > { %1681 = vmatpush3.bf16.msra.mxu1 %v1870_v56  ;;  %v1874_v56 = vld [vmem:[#allocation5 + $0xa8] sm:$0xff]  }
  0x73   : > { %1682 = vmatprep.subr.bf16.mxu1 %v2044_v42 }
  0x74   : > { %1663 = vmatpush3.bf16.msra.mxu0 %v1855_v40  ;;  %v1877_v40 = vld [vmem:[%s2357_s5 + $0x38] sm:$0xff]  }
  0x75   : > { %1688 = vmatprep.subr.bf16.mxu0 %v2044_v42 }
  0x76   : > { %1683 = vmatpush3.bf16.msra.mxu1 %v1871_v57  ;;  %v1884_v57 = vld [vmem:[%s2357_s5 + $0x18] sm:$0xff]  }
  0x77   : > { %1665 = vmatmul.mubr.bf16.vlgmr.msra.gmra.mxu0 %v660_v30  ;;  %1708 = vmatprep.subr.bf16.mxu1 %v2044_v42 }
  0x78   : > { %1689 = vmatpush3.bf16.msra.mxu0 %v1856_v41  ;;  %1704 = vmatprep.mubr.msk.bf16.mxu0 %vm2045_vm2, %v2044_v42 }
  0x79   : > { %1690 = vmatprep.subr.bf16.mxu0 %v2044_v42 }
  0x7c   : > { %1691 = vmatpush3.bf16.msra.mxu0 %v1857_v43 }
  0x7d   : > { %1692 = vmatprep.subr.bf16.mxu0 %v2044_v42 }
  0x80   : > { %1693 = vmatpush3.bf16.msra.mxu0 %v1859_v45 }
  0x81   : > { %1694 = vmatprep.subr.bf16.mxu0 %v2044_v42 }
  0x84   : > { %1695 = vmatpush3.bf16.msra.mxu0 %v1861_v47 }
  0x85   : > { %1696 = vmatprep.subr.bf16.mxu0 %v2044_v42 }
  0x88   : > { %1697 = vmatpush3.bf16.msra.mxu0 %v1863_v49 }
  0x89   : > { %1698 = vmatprep.subr.bf16.mxu0 %v2044_v42 }
  0x8c   : > { %1699 = vmatpush3.bf16.msra.mxu0 %v1865_v51  ;;  %v1872_v51 = vld [vmem:[#allocation5 + $0xb8] sm:$0xff]  }
  0x8d   : > { %1700 = vmatprep.subr.bf16.mxu0 %v2044_v42 }
  0x90   : > { %1701 = vmatpush3.bf16.msra.mxu0 %v1867_v53 }
  0x91   : > { %1702 = vmatprep.subr.bf16.mxu0 %v2044_v42 }
  0x94   : > { %1703 = vmatpush3.bf16.msra.mxu0 %v1869_v55  ;;  %v1883_v55 = vld [vmem:[%s2357_s5 + $0x20] sm:$0xff]  }
  0x95   : > { %1728 = vmatprep.subr.bf16.mxu0 %v2044_v42 }
 0x117   : > { %v1626_v58 = vpop.f32.mrf.mxu0 }
 0x118   : > { %v1646_v59 = vpop.f32.mrf.mxu1 }
 0x119   : > { %v529_v60 = vpop.f32.mrf.mxu0  ;;  %v634_v1 = vadd.f32 %v1646_v59, %v1626_v58  ;;  %v1875_v58 = vld [vmem:[#allocation5 + $0xa0] sm:$0xff]   ;;  %v1885_v59 = vld [vmem:[%s2357_s5 + $0x10] sm:$0xff]  }
 0x11a   : > { %v625_v61 = vpop.f32.mrf.mxu1 }
 0x11b   : > { %v1627_v62 = vpop.f32.mrf.mxu0  ;;  %v626_v4 = vadd.f32 %v625_v61, %v529_v60  ;;  %v1876_v60 = vld [vmem:[#allocation5 + $0x98] sm:$0xff]   ;;  %v1886_v61 = vld [vmem:[%s2357_s5 + $0x8] sm:$0xff]  }
 0x11c   : > { %v1647_v63 = vpop.f32.mrf.mxu1  ;;  %v1878_v62 = vld [vmem:[#allocation5 + $0x90] sm:$0xff]  }
 0x11d   : > { %v532_v0 = vpop.f32.mrf.mxu0  ;;  %v1887_v63 = vld [vmem:[%s2357_s5] sm:$0xff]  }
 0x11e   : > { %v628_v6 = vpop.f32.mrf.mxu1 }
 0x11f   : > { %v629_v11 = vadd.f32 %v628_v6, %v532_v0  ;;  %v1880_v0 = vld [vmem:[#allocation5 + $0x88] sm:$0xff]  }
 0x137   : > { %v1666_v2 = vpop.f32.mrf.mxu0 }
 0x138   : > { %v762_v5 = vadd.f32 %v1666_v2, %v634_v1  ;;  %v1882_v1 = vld [vmem:[#allocation5 + $0x80] sm:$0xff]  }
 0x139   : > { %v746_v7 = vpop.f32.mrf.mxu0 }
 0x13a   : > { %v772_v8 = vadd.f32 %v1495_v3, %v762_v5  ;;  %v760_v9 = vadd.f32 %v746_v7, %v626_v4 }
 0x13b   : > { %v1667_v10 = vpop.f32.mrf.mxu0 }
 0x13c   : > { %v778_v12 = vmul.f32 0.70710677, %v772_v8  ;;  %v770_v13 = vadd.f32 %v1495_v3, %v760_v9  ;;  %v775_v24 = vmul.f32 0.5, %v772_v8 }
 0x13d   : > { %v749_v14 = vpop.f32.mrf.mxu0 }
 0x13e   : > { %1888 = verf.f32 %v778_v12  ;;  %v776_v16 = vmul.f32 0.70710677, %v770_v13  ;;  %v761_v17 = vadd.f32 %v749_v14, %v629_v11  ;;  %v773_v30 = vmul.f32 0.5, %v770_v13 }
 0x140   : > { %1890 = verf.f32 %v776_v16  ;;  %v771_v18 = vadd.f32 %v1495_v3, %v761_v17 }
 0x142   : > { %v777_v20 = vmul.f32 0.70710677, %v771_v18  ;;  %v774_v35 = vmul.f32 0.5, %v771_v18 }
 0x144   : > { %1892 = verf.f32 %v777_v20 }
 0x14b   : > { %v1889_v23 = vpop.eup %1888 }
 0x14c   : > { %v784_v25 = vadd.f32 1.0, %v1889_v23 }
 0x14d   : > { %v1891_v26 = vpop.eup %1890 }
 0x14e   : > { %v787_v27 = vmul.f32 %v784_v25, %v775_v24  ;;  %v782_v28 = vadd.f32 1.0, %v1891_v26 }
 0x150   : > { %v815_v32 = vsel %vm803_vm3, %v787_v27, 0.0  ;;  %v785_v33 = vmul.f32 %v782_v28, %v773_v30 }
 0x151   : > { %v1893_v31 = vpop.eup %1892  ;;  %v2235_v37 = vpack.c.bf16 %v815_v32, %v815_v32 }
 0x152   : > { %v783_v36 = vadd.f32 1.0, %v1893_v31  ;;  %v813_v39 = vsel %vm798_vm4, %v785_v33, 0.0 }
 0x153   : > { %v859_v45 = vshll.u32 %v2235_v37, 16  ;;  %v1062_v3 = vrot.slane %v2235_v37, 1 }
 0x154   : > { %v786_v38 = vmul.f32 %v783_v36, %v774_v35  ;;  %v1532_v36 = vld [vmem:[%s2358_s6] ss:$0 sm:$0xff] }
 0x155   : > { %v861_v50 = vrot.slane %v859_v45, 1  ;;  %v1292_v45 = vand.u32 127, %v790_v15 }
 0x156   : > { %v1513_v41 = vpack.c.bf16 %v786_v38, %v785_v33  ;;  %v816_v43 = vpack.c.bf16 %v786_v38, %v813_v39 }
 0x157   : > { %vm1293_vm7 = vcmp.lt.s32.totalorder %v1292_v45, 8 }
 0x158   : > { %1705 = vmatmul.mubr.msk.bf16.vlgmr.msra.gmra.mxu0 %vm1512_vm6, %v1513_v41  ;;  %v854_v44 = vshll.u32 %v816_v43, 16  ;;  %v852_v47 = vshrl.u32 %v816_v43, 16  ;;  %v1061_v2 = vrot.slane %v816_v43, 1 }
 0x159   : > { %1729 = vmatpush3.bf16.msra.mxu0 %v1877_v40  ;;  %1744 = vmatprep.mubr.msk.bf16.mxu0 %vm2045_vm2, %v2044_v42 }
 0x15a   : > { %v856_v48 = vrot.slane %v854_v44, 1  ;;  %1730 = vmatprep.subr.bf16.mxu0 %v2044_v42  ;;  %v1063_v4 = vsel %vm658_vm1, %v1061_v2, %v1062_v3 }
 0x15c   : > { %v857_v49 = vor.u32 %v856_v48, %v852_v47  ;;  %v1533_v48 = vsel %vm1293_vm7, 1.0, %v2044_v42 }
 0x15d   : > { %1731 = vmatpush3.bf16.msra.mxu0 %v1879_v46 }
 0x15e   : > { %v862_v53 = vsel %vm429_vm0, %v857_v49, %v861_v50  ;;  %1732 = vmatprep.subr.bf16.mxu0 %v2044_v42 }
 0x15f   : > { %1685 = vmatmul.mubr.bf16.vlgmr.msra.gmra.mxu1 %v862_v53 }
 0x160   : > { %1709 = vmatpush3.bf16.msra.mxu1 %v1872_v51  ;;  %1724 = vmatprep.mubr.msk.bf16.mxu1 %vm2045_vm2, %v2044_v42 }
 0x161   : > { %1710 = vmatprep.subr.bf16.mxu1 %v2044_v42  ;;  %1733 = vmatpush3.bf16.msra.mxu0 %v1881_v52 }
 0x162   : > { %1734 = vmatprep.subr.bf16.mxu0 %v2044_v42 }
 0x164   : > { %1711 = vmatpush3.bf16.msra.mxu1 %v1873_v54 }
 0x165   : > { %1712 = vmatprep.subr.bf16.mxu1 %v2044_v42  ;;  %1735 = vmatpush3.bf16.msra.mxu0 %v1883_v55 }
 0x166   : > { %1736 = vmatprep.subr.bf16.mxu0 %v2044_v42 }
 0x168   : > { %1713 = vmatpush3.bf16.msra.mxu1 %v1874_v56 }
 0x169   : > { %1714 = vmatprep.subr.bf16.mxu1 %v2044_v42  ;;  %1737 = vmatpush3.bf16.msra.mxu0 %v1884_v57 }
 0x16a   : > { %1738 = vmatprep.subr.bf16.mxu0 %v2044_v42 }
 0x16c   : > { %1715 = vmatpush3.bf16.msra.mxu1 %v1875_v58 }
 0x16d   : > { %1716 = vmatprep.subr.bf16.mxu1 %v2044_v42  ;;  %1739 = vmatpush3.bf16.msra.mxu0 %v1885_v59 }
 0x16e   : > { %1740 = vmatprep.subr.bf16.mxu0 %v2044_v42 }
 0x170   : > { %1717 = vmatpush3.bf16.msra.mxu1 %v1876_v60 }
 0x171   : > { %1718 = vmatprep.subr.bf16.mxu1 %v2044_v42  ;;  %1741 = vmatpush3.bf16.msra.mxu0 %v1886_v61 }
 0x172   : > { %1742 = vmatprep.subr.bf16.mxu0 %v2044_v42 }
 0x174   : > { %1719 = vmatpush3.bf16.msra.mxu1 %v1878_v62  ;;  %v1534_v62 = vld [vmem:[%s2359_s7] ss:$0 sm:$0xff] }
 0x175   : > { %1720 = vmatprep.subr.bf16.mxu1 %v2044_v42  ;;  %1743 = vmatpush3.bf16.msra.mxu0 %v1887_v63 }
 0x178   : > { %1721 = vmatpush3.bf16.msra.mxu1 %v1880_v0  ;;  %1745 = vmatmul.mubr.bf16.vlgmr.msra.gmra.mxu0 %v2206_v34  ;;  %v1535_v0 = vld [vmem:[%s2360_s8] ss:$0 sm:$0xff] }
 0x179   : > { %1722 = vmatprep.subr.bf16.mxu1 %v2044_v42 }
 0x17c   : > { %1723 = vmatpush3.bf16.msra.mxu1 %v1882_v1 }
 0x17f   : > { %1725 = vmatmul.mubr.bf16.vlgmr.msra.gmra.mxu1 %v1063_v4 }
 0x218   : > { %v1035_v5 = vpop.f32.mrf.mxu0 }
 0x21a   : > { %v1706_v6 = vpop.f32.mrf.mxu0 }
 0x21c   : > { %v1038_v7 = vpop.f32.mrf.mxu0 }
 0x21e   : > { %v1707_v8 = vpop.f32.mrf.mxu0 }
 0x21f   : > { %v946_v9 = vpop.f32.mrf.mxu1 }
 0x220   : > { %v1036_v16 = vadd.f32 %v1035_v5, %v946_v9 }
 0x221   : > { %v1686_v10 = vpop.f32.mrf.mxu1 }
 0x223   : > { %v949_v11 = vpop.f32.mrf.mxu1 }
 0x224   : > { %v1039_v22 = vadd.f32 %v1038_v7, %v949_v11 }
 0x225   : > { %v1687_v12 = vpop.f32.mrf.mxu1 }
 0x238   : > { %v1273_v13 = vpop.f32.mrf.mxu0 }
 0x23a   : > { %v1746_v14 = vpop.f32.mrf.mxu0 }
 0x23c   : > { %v1276_v34 = vpop.f32.mrf.mxu0 }
 0x23e   : > { %v1747_v17 = vpop.f32.mrf.mxu0 }
 0x23f   : > { %v1147_v18 = vpop.f32.mrf.mxu1 }
 0x240   : > { %v1154_v20 = vadd.f32 %v1147_v18, %v1036_v16 }
 0x241   : > { %v1726_v21 = vpop.f32.mrf.mxu1 }
 0x242   : > { %v1163_v23 = vadd.f32 %v1523_v19, %v1154_v20 }
 0x243   : > { %v1150_v24 = vpop.f32.mrf.mxu1 }
 0x244   : > { %v1167_v25 = vmul.f32 0.70710677, %v1163_v23  ;;  %v1155_v26 = vadd.f32 %v1150_v24, %v1039_v22  ;;  %v1165_v31 = vmul.f32 0.5, %v1163_v23 }
 0x245   : > { %v1727_v27 = vpop.f32.mrf.mxu1 }
 0x246   : > { %1894 = verf.f32 %v1167_v25  ;;  %v1164_v28 = vadd.f32 %v1523_v19, %v1155_v26 }
 0x248   : > { %v1168_v29 = vmul.f32 0.70710677, %v1164_v28  ;;  %v1166_v38 = vmul.f32 0.5, %v1164_v28 }
 0x24a   : > { %1896 = verf.f32 %v1168_v29 }
 0x253   : > { %v1895_v30 = vpop.eup %1894 }
 0x254   : > { %v1171_v32 = vadd.f32 1.0, %v1895_v30 }
 0x256   : > { %v1173_v33 = vmul.f32 %v1171_v32, %v1165_v31 }
 0x257   : > { %v1897_v35 = vpop.eup %1896 }
 0x258   : > { %v1280_v37 = vadd.f32 %v1273_v13, %v1173_v33  ;;  %v1172_v39 = vadd.f32 1.0, %v1897_v35 }
 0x25a   : > { %v1174_v40 = vmul.f32 %v1172_v39, %v1166_v38  ;;  %v1289_v41 = vadd.f32 %v1532_v36, %v1280_v37 }
 0x25c   : > { %v1281_v43 = vadd.f32 %v1276_v34, %v1174_v40  ;;  %1296 = vadd.xlane.f32.xlu0 %v1289_v41 }
 0x25e   : > { %v1290_v44 = vadd.f32 %v1532_v36, %v1281_v43 }
 0x260   : > { %1298 = vadd.xlane.f32.xlu0 %v1290_v44 }
 0x2e5   : > { %v1297_v46 = vpop.xlane.xlu0 %1296 }
 0x2e6   : > { %v1300_v47 = vmul.f32 0.125, %v1297_v46 }
 0x2e8   : > { %v1302_v49 = vsub.f32 %v1289_v41, %v1300_v47 }
 0x2e9   : > { %v1299_v50 = vpop.xlane.xlu0 %1298 }
 0x2ea   : > { %v1301_v51 = vmul.f32 0.125, %v1299_v50  ;;  %v1304_v52 = vmul.f32 %v1533_v48, %v1302_v49 }
 0x2ec   : > { %v1303_v53 = vsub.f32 %v1290_v44, %v1301_v51  ;;  %v1306_v54 = vmul.f32 %v1304_v52, %v1304_v52 }
 0x2ee   : > { %1308 = vadd.xlane.f32.xlu1 %v1306_v54  ;;  %v1305_v55 = vmul.f32 %v1533_v48, %v1303_v53 }
 0x2f0   : > { %v1307_v56 = vmul.f32 %v1305_v55, %v1305_v55 }
 0x2f2   : > { %1310 = vadd.xlane.f32.xlu1 %v1307_v56 }
 0x377   : > { %v1309_v57 = vpop.xlane.xlu1 %1308 }
 0x378   : > { %v1312_v58 = vmul.f32 0.125, %v1309_v57 }
 0x37a   : > { %v1314_v59 = vadd.f32 1e-05, %v1312_v58 }
 0x37b   : > { %v1311_v15 = vpop.xlane.xlu1 %1310 }
 0x37c   : > { %1898 = vrsqrt.f32 %v1314_v59  ;;  %v1313_v60 = vmul.f32 0.125, %v1311_v15 }
 0x37e   : > { %v1315_v61 = vadd.f32 1e-05, %v1313_v60 }
 0x380   : > { %1900 = vrsqrt.f32 %v1315_v61 }
 0x389   : > { %v1899_v42 = vpop.eup %1898 }
 0x38a   : > { %v1318_v63 = vmul.f32 %v1899_v42, %v1304_v52 }
 0x38c   : > { %v1327_v1 = vmul.f32 %v1534_v62, %v1318_v63 }
 0x38d   : > { %v1901_v2 = vpop.eup %1900 }
 0x38e   : > { %v1336_v3 = vadd.f32 %v1535_v0, %v1327_v1  ;;  %v1319_v4 = vmul.f32 %v1901_v2, %v1305_v55 }
 0x390   : > { %v1328_v5 = vmul.f32 %v1534_v62, %v1319_v4  ;;  %1338 = vst [vmem:[%s379_s28] sm:$0xff] %v1336_v3 }
 0x392   : > { %v1337_v6 = vadd.f32 %v1535_v0, %v1328_v5 }
 0x394   : > { %1339 = vst [vmem:[%s379_s28 + $0x8] sm:$0xff] %v1337_v6 }
 0x395   : > { %1967 = shalt.err (!%p1964_p9)
}
 0x396   : > { %s1968_s26 = scalar_lea.hbm %s2303_s24, 256  ;;  %s1972_s28 = scalar_lea.hbm %s2361_s9, 512 }
 0x397   : > { %p1969_p12 = scmp.ne.s32.totalorder %s2303_s24, %s1968_s26  ;;  %p1973_p5 = scmp.lt.s32.totalorder %s2303_s24, %s2361_s9 }
 0x398   : > { %p1974_p3 = scmp.lt.s32.totalorder %s1972_s28, %s1968_s26 }
 0x399   : > { %p1970_p1 = pnand %p1969_p12, %p2370_p10 }
 0x39a   : > { %p1975_p4 = por %p1974_p3, %p1973_p5 }
 0x39b   : > { %p1971_p2 = pneg %p1970_p1 }
 0x39d   : > { %p1976_p8 = pnand %p1975_p4, %p1971_p2 }
 0x39f   : > { %1979 = shalt.err (!%p1976_p8)
}
 0x3a0   : > { %s2048_s29 = smov 128   ;;  %s2049_s12 = smov 8  }
 0x3a1   : > { %1757 = dma.vmem_to_hbm [thread:$0]  (%p2370_p10), %s2305_s15, 256, %s2303_s24, %s2307_s27, %s2048_s29, %s2048_s29, %s2049_s12  }
 0x3a2 PF: > { %p1774_p11 = scmp.ge.s32.totalorder %s2038_s14, 2  ;;  %s1371_s16 = sand.u32 1, %s2018_s30  }
 0x3a3   : > { %p2371_p13 = scmp.ne.s32.totalorder %s2366_s21, 0  ;;  %s1372_s18 = scalar_lea.sflag [#allocation4], %s1371_s16 }
 0x3a5   : > { %p1767_p0 = pnand %p1774_p11, %p2371_p13 }
 0x3a7   : > { %p1768_p6 = pneg %p1767_p0 }
 0x3a9   : > { %2013 = dma.done.wait (%p1768_p6), %s1372_s18, 256  }
 0x3aa   : > { %2015 = vsyncadd (%p1768_p6), %s1372_s18, 4294967040  ;;  %s24_s14 = sadd.s32 1, %s2038_s14   ;;  %s2372_s19 = sld [smem:[#allocation11_spill]] }
 0x3ab   : > { %p21_p7 = scmp.ge.s32.totalorder %s24_s14, 4   ;;  %s2373_s30 = smov %s2022_s10 }
 0x3ac   : > { %s2374_s10 = smov %s2026_s11  ;;  %s2375_s11 = smov %s2153_s22 }
 0x3ad   : > { %s2376_s12 = smov %s2034_s13  ;;  %23 = sbr.rel (!%p21_p7) target bundleno = 6 (0x6), region = 104 }
 0x3b0   : > { %s2377_s13 = smov %s2372_s19 }
 0x3b2   :  { %1377 = vsyncpa [#allocation3], 1 }
 0x3b3   :  { %1379 = vsyncpa [#allocation3 + $0x1], 1 }
 0x3b4   :  { %1380 = vsyncpa [#allocation6], 1 }
 0x3b5   :  { %1381 = vsyncpa [#allocation4], 1 }
 0x3b6   :  { %1383 = vsyncpa [#allocation4 + $0x1], 1 }

</bundles_post_ra>
